<compile_context>
chip_gen: v7x
topology: tpu7x:2x2x1
jax: 0.10.0
libtpu: 0.0.40
codegen_flags: <defaults>
</compile_context>

<pallas_src>
import numpy as np

import jax
import jax.numpy as jnp
from jax.experimental import pallas as pl
from jax.experimental.pallas import tpu as pltpu


# ---------------------------------------------------------------------------
# Parameter init: conv weights in PyTorch layout (Cout, Cin, KH, KW),
# BatchNorm gamma/beta at their default init.
# ---------------------------------------------------------------------------
def init_discriminator_params(key, input_nc, ndf=8, n_layers=3):
    chans = [input_nc, ndf]
    mult = 1
    for _ in range(n_layers):
        chans.append(ndf * mult * 2)
        mult *= 2
    chans.append(1)
    params = []
    for idx in range(len(chans) - 1):
        cin, cout = chans[idx], chans[idx + 1]
        key, k = jax.random.split(key)
        w = jax.random.normal(k, (cout, cin, 4, 4), jnp.float32) * 0.05
        has_bn = (0 < idx < len(chans) - 2)          # middle layers only
        params.append(dict(
            w=w,
            gamma=jnp.ones((cout,), jnp.float32),    # BatchNorm default init
            beta=jnp.zeros((cout,), jnp.float32),
            has_bn=has_bn,
        ))
    return params


# ---------------------------------------------------------------------------
# Host-side (build-time) constant matrices.
# ---------------------------------------------------------------------------
def _row_select(n, H, Ho, stride):
    """(4, n*Ho, n*H): L[i][b*Ho+ho, b*H+h] = 1 iff h == stride*ho + i - 1.

    Rows that would read the zero padding are left all-zero."""
    L = np.zeros((4, n * Ho, n * H), dtype=np.float32)
    for i in range(4):
        for b in range(n):
            for ho in range(Ho):
                h = stride * ho + i - 1
                if 0 <= h < H:
                    L[i, b * Ho + ho, b * H + h] = 1.0
    return L


def _col_weight(w_pt, W, Wo, stride):
    """(4, W*Cin, Wo*Cout): column taps + conv weights folded into one matrix.

    B[i][w*Cin+ci, wo*Cout+co] = W[co, ci, i, w - (stride*wo - 1)] when the
    kernel-column index is in range; padded columns simply never appear."""
    cout, cin, kh, kw = w_pt.shape
    w_np = np.asarray(w_pt, dtype=np.float32)
    B = np.zeros((4, W * cin, Wo * cout), dtype=np.float32)
    for i in range(kh):
        for wo in range(Wo):
            for j in range(kw):
                w = stride * wo + j - 1
                if 0 <= w < W:
                    B[i, w * cin:(w + 1) * cin, wo * cout:(wo + 1) * cout] = \
                        w_np[:, :, i, j].T
    return B


# ---------------------------------------------------------------------------
# Fused discriminator builder.
# ---------------------------------------------------------------------------
def make_discriminator(params, input_shape):
    """Precompute all constant operands and return a jitted fused forward fn."""
    N, C0, H0, W0 = (int(d) for d in input_shape)
    n_conv = len(params)

    plan = []        # static per-layer metadata (closed over by the kernel)
    operands = []    # constant arrays handed to the kernel after x
    H, W, C = H0, W0, C0
    for idx, p in enumerate(params):
        last = idx == n_conv - 1
        stride = 1 if last else 2
        w = p["w"]
        cout = int(w.shape[0])
        Ho = (H + 2 - 4) // stride + 1
        Wo = (W + 2 - 4) // stride + 1
        assert Ho > 0 and Wo > 0, "input too small for discriminator depth"

        operands.append(jnp.asarray(_row_select(N, H, Ho, stride), jnp.bfloat16))
        operands.append(jnp.asarray(_col_weight(w, W, Wo, stride), jnp.bfloat16))

        lyr = dict(has_bn=bool(p["has_bn"]), has_lrelu=not last,
                   inv_m=1.0 / float(N * Ho * Wo))
        if lyr["has_bn"]:
            # 0/1 map: per-channel reduce + broadcast in the (wo, co) column
            # layout, done with one small f32 matmul inside the kernel.
            cmap = np.kron(np.ones((Wo, Wo), np.float32),
                           np.eye(cout, dtype=np.float32))
            gamma_t = np.tile(np.asarray(p["gamma"], np.float32), Wo)
            beta_t = np.tile(np.asarray(p["beta"], np.float32), Wo)
            operands.append(jnp.asarray(cmap, jnp.float32))
            operands.append(jnp.asarray(gamma_t.reshape(1, Wo * cout)))
            operands.append(jnp.asarray(beta_t.reshape(1, Wo * cout)))
        plan.append(lyr)
        H, W, C = Ho, Wo, cout

    Hf, Wf, Cf = H, W, C                       # final layer geometry

    def kernel(*refs):
        x_ref, out_ref = refs[0], refs[-1]
        lrefs = refs[1:-1]
        a = x_ref[...]                         # (N*H0, W0*C0) f32, VMEM-resident
        r = 0
        for lyr in plan:
            L_ref, B_ref = lrefs[r], lrefs[r + 1]
            r += 2
            a_bf = a.astype(jnp.bfloat16)      # bf16 MXU inputs, f32 accumulate
            y = None
            for i in range(4):                 # 4 kernel rows (k=4), unrolled
                rows = jnp.dot(L_ref[i], a_bf,
                               preferred_element_type=jnp.float32)
                part = jnp.dot(rows.astype(jnp.bfloat16), B_ref[i],
                               preferred_element_type=jnp.float32)
                y = part if y is None else y + part
            if lyr["has_bn"]:
                cmap_ref, g_ref, b_ref = lrefs[r], lrefs[r + 1], lrefs[r + 2]
                r += 3
                inv_m = lyr["inv_m"]
                # one pass over y: sum and sum-of-squares, then channel map
                s1 = jnp.sum(y, axis=0, keepdims=True)           # (1, Wo*Cout)
                s2 = jnp.sum(y * y, axis=0, keepdims=True)
                mean = jnp.dot(s1, cmap_ref[...],
                               preferred_element_type=jnp.float32) * inv_m
                ex2 = jnp.dot(s2, cmap_ref[...],
                              preferred_element_type=jnp.float32) * inv_m
                var = jnp.maximum(ex2 - mean * mean, 0.0)        # biased var
                y = (y - mean) * jax.lax.rsqrt(var + 1e-5) * g_ref[...] + b_ref[...]
            if lyr["has_lrelu"]:
                y = jnp.where(y >= 0.0, y, 0.2 * y)
            a = y
        out_ref[...] = a.astype(out_ref.dtype)

    n_in = 1 + len(operands)
    fused = pl.pallas_call(
        kernel,
        out_shape=jax.ShapeDtypeStruct((N * Hf, Wf * Cf), jnp.float32),
        in_specs=[pl.BlockSpec(memory_space=pltpu.MemorySpace.VMEM)] * n_in,
        out_specs=pl.BlockSpec(memory_space=pltpu.MemorySpace.VMEM),
    )

    @jax.jit
    def forward(x_nchw):
        # NCHW -> NHWC -> flat (N*H, W*C); only glue left outside the kernel.
        x = jnp.transpose(x_nchw, (0, 2, 3, 1)).astype(jnp.float32)
        y = fused(x.reshape(N * H0, W0 * C0), *operands)
        y = y.reshape(N, Hf, Wf, Cf)
        return jnp.transpose(y, (0, 3, 1, 2))  # NHWC -> NCHW

    return forward


if __name__ == "__main__":
    key = jax.random.PRNGKey(0)
    k_params, k_x = jax.random.split(key)

    input_nc, ndf, n_layers = 4, 8, 3
    # 32x32 so the 4 stride-2 convs + final stride-1 conv give (N, 1, 1, 1).
    N, H, W = 2, 32, 32
    params = init_discriminator_params(k_params, input_nc, ndf=ndf, n_layers=n_layers)
    forward = make_discriminator(params, (N, input_nc, H, W))

    x = jax.random.normal(k_x, (N, input_nc, H, W), jnp.float32)
    out = forward(x)
    jax.block_until_ready(out)
    assert out.shape == (N, 1, 1, 1), out.shape
    print("KERNEL_OK")
</pallas_src>

<mosaic_0001>
module attributes {stable_mosaic.version = 11 : i64} {
  func.func @kernel(%arg0: memref<64x128xf32, #tpu.memory_space<vmem>>, %arg1: memref<4x32x64xbf16, #tpu.memory_space<vmem>>, %arg2: memref<4x128x128xbf16, #tpu.memory_space<vmem>>, %arg3: memref<4x16x32xbf16, #tpu.memory_space<vmem>>, %arg4: memref<4x128x128xbf16, #tpu.memory_space<vmem>>, %arg5: memref<128x128xf32, #tpu.memory_space<vmem>>, %arg6: memref<1x128xf32, #tpu.memory_space<vmem>>, %arg7: memref<1x128xf32, #tpu.memory_space<vmem>>, %arg8: memref<4x8x16xbf16, #tpu.memory_space<vmem>>, %arg9: memref<4x128x128xbf16, #tpu.memory_space<vmem>>, %arg10: memref<128x128xf32, #tpu.memory_space<vmem>>, %arg11: memref<1x128xf32, #tpu.memory_space<vmem>>, %arg12: memref<1x128xf32, #tpu.memory_space<vmem>>, %arg13: memref<4x4x8xbf16, #tpu.memory_space<vmem>>, %arg14: memref<4x128x128xbf16, #tpu.memory_space<vmem>>, %arg15: memref<128x128xf32, #tpu.memory_space<vmem>>, %arg16: memref<1x128xf32, #tpu.memory_space<vmem>>, %arg17: memref<1x128xf32, #tpu.memory_space<vmem>>, %arg18: memref<4x2x4xbf16, #tpu.memory_space<vmem>>, %arg19: memref<4x128x1xbf16, #tpu.memory_space<vmem>>, %arg20: memref<2x1xf32, #tpu.memory_space<vmem>>) attributes {dimension_semantics = [], scalar_prefetch = 0 : i64, scratch_operands = 0 : i64, tpu.core_type = #tpu.core_type<tc>} {
    %c0 = arith.constant 0 : index
    %c0_0 = arith.constant 0 : index
    %0 = vector.load %arg0[%c0, %c0_0] : memref<64x128xf32, #tpu.memory_space<vmem>>, vector<64x128xf32>
    %1 = arith.truncf %0 : vector<64x128xf32> to vector<64x128xbf16>
    %c0_1 = arith.constant 0 : index
    %c0_2 = arith.constant 0 : index
    %c0_3 = arith.constant 0 : index
    %2 = vector.load %arg1[%c0_1, %c0_2, %c0_3] : memref<4x32x64xbf16, #tpu.memory_space<vmem>>, vector<1x32x64xbf16>
    %3 = vector.shape_cast %2 : vector<1x32x64xbf16> to vector<32x64xbf16>
    %cst = arith.constant dense<0.000000e+00> : vector<32x128xf32>
    %4 = tpu.matmul %3, %1, %cst {dimension_numbers = #tpu.dot_dimension_numbers<[1], [0], [0], [1], [0, 0, 1, 1], [], []>} : vector<32x64xbf16>, vector<64x128xbf16>, vector<32x128xf32> -> vector<32x128xf32>
    %5 = arith.truncf %4 : vector<32x128xf32> to vector<32x128xbf16>
    %c0_4 = arith.constant 0 : index
    %c0_5 = arith.constant 0 : index
    %c0_6 = arith.constant 0 : index
    %6 = vector.load %arg2[%c0_4, %c0_5, %c0_6] : memref<4x128x128xbf16, #tpu.memory_space<vmem>>, vector<1x128x128xbf16>
    %7 = vector.shape_cast %6 : vector<1x128x128xbf16> to vector<128x128xbf16>
    %cst_7 = arith.constant dense<0.000000e+00> : vector<32x128xf32>
    %8 = tpu.matmul %5, %7, %cst_7 {dimension_numbers = #tpu.dot_dimension_numbers<[1], [0], [0], [1], [0, 0, 1, 1], [], []>} : vector<32x128xbf16>, vector<128x128xbf16>, vector<32x128xf32> -> vector<32x128xf32>
    %c1 = arith.constant 1 : index
    %c0_8 = arith.constant 0 : index
    %c0_9 = arith.constant 0 : index
    %9 = vector.load %arg1[%c1, %c0_8, %c0_9] : memref<4x32x64xbf16, #tpu.memory_space<vmem>>, vector<1x32x64xbf16>
    %10 = vector.shape_cast %9 : vector<1x32x64xbf16> to vector<32x64xbf16>
    %cst_10 = arith.constant dense<0.000000e+00> : vector<32x128xf32>
    %11 = tpu.matmul %10, %1, %cst_10 {dimension_numbers = #tpu.dot_dimension_numbers<[1], [0], [0], [1], [0, 0, 1, 1], [], []>} : vector<32x64xbf16>, vector<64x128xbf16>, vector<32x128xf32> -> vector<32x128xf32>
    %12 = arith.truncf %11 : vector<32x128xf32> to vector<32x128xbf16>
    %c1_11 = arith.constant 1 : index
    %c0_12 = arith.constant 0 : index
    %c0_13 = arith.constant 0 : index
    %13 = vector.load %arg2[%c1_11, %c0_12, %c0_13] : memref<4x128x128xbf16, #tpu.memory_space<vmem>>, vector<1x128x128xbf16>
    %14 = vector.shape_cast %13 : vector<1x128x128xbf16> to vector<128x128xbf16>
    %cst_14 = arith.constant dense<0.000000e+00> : vector<32x128xf32>
    %15 = tpu.matmul %12, %14, %cst_14 {dimension_numbers = #tpu.dot_dimension_numbers<[1], [0], [0], [1], [0, 0, 1, 1], [], []>} : vector<32x128xbf16>, vector<128x128xbf16>, vector<32x128xf32> -> vector<32x128xf32>
    %16 = arith.addf %8, %15 : vector<32x128xf32>
    %c2 = arith.constant 2 : index
    %c0_15 = arith.constant 0 : index
    %c0_16 = arith.constant 0 : index
    %17 = vector.load %arg1[%c2, %c0_15, %c0_16] : memref<4x32x64xbf16, #tpu.memory_space<vmem>>, vector<1x32x64xbf16>
    %18 = vector.shape_cast %17 : vector<1x32x64xbf16> to vector<32x64xbf16>
    %cst_17 = arith.constant dense<0.000000e+00> : vector<32x128xf32>
    %19 = tpu.matmul %18, %1, %cst_17 {dimension_numbers = #tpu.dot_dimension_numbers<[1], [0], [0], [1], [0, 0, 1, 1], [], []>} : vector<32x64xbf16>, vector<64x128xbf16>, vector<32x128xf32> -> vector<32x128xf32>
    %20 = arith.truncf %19 : vector<32x128xf32> to vector<32x128xbf16>
    %c2_18 = arith.constant 2 : index
    %c0_19 = arith.constant 0 : index
    %c0_20 = arith.constant 0 : index
    %21 = vector.load %arg2[%c2_18, %c0_19, %c0_20] : memref<4x128x128xbf16, #tpu.memory_space<vmem>>, vector<1x128x128xbf16>
    %22 = vector.shape_cast %21 : vector<1x128x128xbf16> to vector<128x128xbf16>
    %cst_21 = arith.constant dense<0.000000e+00> : vector<32x128xf32>
    %23 = tpu.matmul %20, %22, %cst_21 {dimension_numbers = #tpu.dot_dimension_numbers<[1], [0], [0], [1], [0, 0, 1, 1], [], []>} : vector<32x128xbf16>, vector<128x128xbf16>, vector<32x128xf32> -> vector<32x128xf32>
    %24 = arith.addf %16, %23 : vector<32x128xf32>
    %c3 = arith.constant 3 : index
    %c0_22 = arith.constant 0 : index
    %c0_23 = arith.constant 0 : index
    %25 = vector.load %arg1[%c3, %c0_22, %c0_23] : memref<4x32x64xbf16, #tpu.memory_space<vmem>>, vector<1x32x64xbf16>
    %26 = vector.shape_cast %25 : vector<1x32x64xbf16> to vector<32x64xbf16>
    %cst_24 = arith.constant dense<0.000000e+00> : vector<32x128xf32>
    %27 = tpu.matmul %26, %1, %cst_24 {dimension_numbers = #tpu.dot_dimension_numbers<[1], [0], [0], [1], [0, 0, 1, 1], [], []>} : vector<32x64xbf16>, vector<64x128xbf16>, vector<32x128xf32> -> vector<32x128xf32>
    %28 = arith.truncf %27 : vector<32x128xf32> to vector<32x128xbf16>
    %c3_25 = arith.constant 3 : index
    %c0_26 = arith.constant 0 : index
    %c0_27 = arith.constant 0 : index
    %29 = vector.load %arg2[%c3_25, %c0_26, %c0_27] : memref<4x128x128xbf16, #tpu.memory_space<vmem>>, vector<1x128x128xbf16>
    %30 = vector.shape_cast %29 : vector<1x128x128xbf16> to vector<128x128xbf16>
    %cst_28 = arith.constant dense<0.000000e+00> : vector<32x128xf32>
    %31 = tpu.matmul %28, %30, %cst_28 {dimension_numbers = #tpu.dot_dimension_numbers<[1], [0], [0], [1], [0, 0, 1, 1], [], []>} : vector<32x128xbf16>, vector<128x128xbf16>, vector<32x128xf32> -> vector<32x128xf32>
    %32 = arith.addf %24, %31 : vector<32x128xf32>
    %cst_29 = arith.constant 0.000000e+00 : f32
    %33 = vector.broadcast %cst_29 : f32 to vector<32x128xf32>
    %34 = arith.cmpf oge, %32, %33 : vector<32x128xf32>
    %cst_30 = arith.constant 2.000000e-01 : f32
    %35 = vector.broadcast %cst_30 : f32 to vector<32x128xf32>
    %36 = arith.mulf %35, %32 : vector<32x128xf32>
    %37 = arith.select %34, %32, %36 : vector<32x128xi1>, vector<32x128xf32>
    %38 = arith.truncf %37 : vector<32x128xf32> to vector<32x128xbf16>
    %c0_31 = arith.constant 0 : index
    %c0_32 = arith.constant 0 : index
    %c0_33 = arith.constant 0 : index
    %39 = vector.load %arg3[%c0_31, %c0_32, %c0_33] : memref<4x16x32xbf16, #tpu.memory_space<vmem>>, vector<1x16x32xbf16>
    %40 = vector.shape_cast %39 : vector<1x16x32xbf16> to vector<16x32xbf16>
    %cst_34 = arith.constant dense<0.000000e+00> : vector<16x128xf32>
    %41 = tpu.matmul %40, %38, %cst_34 {dimension_numbers = #tpu.dot_dimension_numbers<[1], [0], [0], [1], [0, 0, 1, 1], [], []>} : vector<16x32xbf16>, vector<32x128xbf16>, vector<16x128xf32> -> vector<16x128xf32>
    %42 = arith.truncf %41 : vector<16x128xf32> to vector<16x128xbf16>
    %c0_35 = arith.constant 0 : index
    %c0_36 = arith.constant 0 : index
    %c0_37 = arith.constant 0 : index
    %43 = vector.load %arg4[%c0_35, %c0_36, %c0_37] : memref<4x128x128xbf16, #tpu.memory_space<vmem>>, vector<1x128x128xbf16>
    %44 = vector.shape_cast %43 : vector<1x128x128xbf16> to vector<128x128xbf16>
    %cst_38 = arith.constant dense<0.000000e+00> : vector<16x128xf32>
    %45 = tpu.matmul %42, %44, %cst_38 {dimension_numbers = #tpu.dot_dimension_numbers<[1], [0], [0], [1], [0, 0, 1, 1], [], []>} : vector<16x128xbf16>, vector<128x128xbf16>, vector<16x128xf32> -> vector<16x128xf32>
    %c1_39 = arith.constant 1 : index
    %c0_40 = arith.constant 0 : index
    %c0_41 = arith.constant 0 : index
    %46 = vector.load %arg3[%c1_39, %c0_40, %c0_41] : memref<4x16x32xbf16, #tpu.memory_space<vmem>>, vector<1x16x32xbf16>
    %47 = vector.shape_cast %46 : vector<1x16x32xbf16> to vector<16x32xbf16>
    %cst_42 = arith.constant dense<0.000000e+00> : vector<16x128xf32>
    %48 = tpu.matmul %47, %38, %cst_42 {dimension_numbers = #tpu.dot_dimension_numbers<[1], [0], [0], [1], [0, 0, 1, 1], [], []>} : vector<16x32xbf16>, vector<32x128xbf16>, vector<16x128xf32> -> vector<16x128xf32>
    %49 = arith.truncf %48 : vector<16x128xf32> to vector<16x128xbf16>
    %c1_43 = arith.constant 1 : index
    %c0_44 = arith.constant 0 : index
    %c0_45 = arith.constant 0 : index
    %50 = vector.load %arg4[%c1_43, %c0_44, %c0_45] : memref<4x128x128xbf16, #tpu.memory_space<vmem>>, vector<1x128x128xbf16>
    %51 = vector.shape_cast %50 : vector<1x128x128xbf16> to vector<128x128xbf16>
    %cst_46 = arith.constant dense<0.000000e+00> : vector<16x128xf32>
    %52 = tpu.matmul %49, %51, %cst_46 {dimension_numbers = #tpu.dot_dimension_numbers<[1], [0], [0], [1], [0, 0, 1, 1], [], []>} : vector<16x128xbf16>, vector<128x128xbf16>, vector<16x128xf32> -> vector<16x128xf32>
    %53 = arith.addf %45, %52 : vector<16x128xf32>
    %c2_47 = arith.constant 2 : index
    %c0_48 = arith.constant 0 : index
    %c0_49 = arith.constant 0 : index
    %54 = vector.load %arg3[%c2_47, %c0_48, %c0_49] : memref<4x16x32xbf16, #tpu.memory_space<vmem>>, vector<1x16x32xbf16>
    %55 = vector.shape_cast %54 : vector<1x16x32xbf16> to vector<16x32xbf16>
    %cst_50 = arith.constant dense<0.000000e+00> : vector<16x128xf32>
    %56 = tpu.matmul %55, %38, %cst_50 {dimension_numbers = #tpu.dot_dimension_numbers<[1], [0], [0], [1], [0, 0, 1, 1], [], []>} : vector<16x32xbf16>, vector<32x128xbf16>, vector<16x128xf32> -> vector<16x128xf32>
    %57 = arith.truncf %56 : vector<16x128xf32> to vector<16x128xbf16>
    %c2_51 = arith.constant 2 : index
    %c0_52 = arith.constant 0 : index
    %c0_53 = arith.constant 0 : index
    %58 = vector.load %arg4[%c2_51, %c0_52, %c0_53] : memref<4x128x128xbf16, #tpu.memory_space<vmem>>, vector<1x128x128xbf16>
    %59 = vector.shape_cast %58 : vector<1x128x128xbf16> to vector<128x128xbf16>
    %cst_54 = arith.constant dense<0.000000e+00> : vector<16x128xf32>
    %60 = tpu.matmul %57, %59, %cst_54 {dimension_numbers = #tpu.dot_dimension_numbers<[1], [0], [0], [1], [0, 0, 1, 1], [], []>} : vector<16x128xbf16>, vector<128x128xbf16>, vector<16x128xf32> -> vector<16x128xf32>
    %61 = arith.addf %53, %60 : vector<16x128xf32>
    %c3_55 = arith.constant 3 : index
    %c0_56 = arith.constant 0 : index
    %c0_57 = arith.constant 0 : index
    %62 = vector.load %arg3[%c3_55, %c0_56, %c0_57] : memref<4x16x32xbf16, #tpu.memory_space<vmem>>, vector<1x16x32xbf16>
    %63 = vector.shape_cast %62 : vector<1x16x32xbf16> to vector<16x32xbf16>
    %cst_58 = arith.constant dense<0.000000e+00> : vector<16x128xf32>
    %64 = tpu.matmul %63, %38, %cst_58 {dimension_numbers = #tpu.dot_dimension_numbers<[1], [0], [0], [1], [0, 0, 1, 1], [], []>} : vector<16x32xbf16>, vector<32x128xbf16>, vector<16x128xf32> -> vector<16x128xf32>
    %65 = arith.truncf %64 : vector<16x128xf32> to vector<16x128xbf16>
    %c3_59 = arith.constant 3 : index
    %c0_60 = arith.constant 0 : index
    %c0_61 = arith.constant 0 : index
    %66 = vector.load %arg4[%c3_59, %c0_60, %c0_61] : memref<4x128x128xbf16, #tpu.memory_space<vmem>>, vector<1x128x128xbf16>
    %67 = vector.shape_cast %66 : vector<1x128x128xbf16> to vector<128x128xbf16>
    %cst_62 = arith.constant dense<0.000000e+00> : vector<16x128xf32>
    %68 = tpu.matmul %65, %67, %cst_62 {dimension_numbers = #tpu.dot_dimension_numbers<[1], [0], [0], [1], [0, 0, 1, 1], [], []>} : vector<16x128xbf16>, vector<128x128xbf16>, vector<16x128xf32> -> vector<16x128xf32>
    %69 = arith.addf %61, %68 : vector<16x128xf32>
    %cst_63 = arith.constant dense<0.000000e+00> : vector<128xf32>
    %70 = vector.multi_reduction <add>, %69, %cst_63 [0] : vector<16x128xf32> to vector<128xf32>
    %71 = vector.shape_cast %70 : vector<128xf32> to vector<1x128xf32>
    %72 = arith.mulf %69, %69 : vector<16x128xf32>
    %cst_64 = arith.constant dense<0.000000e+00> : vector<128xf32>
    %73 = vector.multi_reduction <add>, %72, %cst_64 [0] : vector<16x128xf32> to vector<128xf32>
    %74 = vector.shape_cast %73 : vector<128xf32> to vector<1x128xf32>
    %c0_65 = arith.constant 0 : index
    %c0_66 = arith.constant 0 : index
    %75 = vector.load %arg5[%c0_65, %c0_66] : memref<128x128xf32, #tpu.memory_space<vmem>>, vector<128x128xf32>
    %cst_67 = arith.constant dense<0.000000e+00> : vector<1x128xf32>
    %76 = tpu.matmul %71, %75, %cst_67 {dimension_numbers = #tpu.dot_dimension_numbers<[1], [0], [0], [1], [0, 0, 1, 1], [], []>} : vector<1x128xf32>, vector<128x128xf32>, vector<1x128xf32> -> vector<1x128xf32>
    %cst_68 = arith.constant 7.812500e-03 : f32
    %77 = vector.broadcast %cst_68 : f32 to vector<1x128xf32>
    %78 = arith.mulf %76, %77 : vector<1x128xf32>
    %c0_69 = arith.constant 0 : index
    %c0_70 = arith.constant 0 : index
    %79 = vector.load %arg5[%c0_69, %c0_70] : memref<128x128xf32, #tpu.memory_space<vmem>>, vector<128x128xf32>
    %cst_71 = arith.constant dense<0.000000e+00> : vector<1x128xf32>
    %80 = tpu.matmul %74, %79, %cst_71 {dimension_numbers = #tpu.dot_dimension_numbers<[1], [0], [0], [1], [0, 0, 1, 1], [], []>} : vector<1x128xf32>, vector<128x128xf32>, vector<1x128xf32> -> vector<1x128xf32>
    %cst_72 = arith.constant 7.812500e-03 : f32
    %81 = vector.broadcast %cst_72 : f32 to vector<1x128xf32>
    %82 = arith.mulf %80, %81 : vector<1x128xf32>
    %83 = arith.mulf %78, %78 : vector<1x128xf32>
    %84 = arith.subf %82, %83 : vector<1x128xf32>
    %cst_73 = arith.constant 0.000000e+00 : f32
    %85 = vector.broadcast %cst_73 : f32 to vector<1x128xf32>
    %86 = arith.maximumf %84, %85 : vector<1x128xf32>
    %87 = vector.broadcast %78 : vector<1x128xf32> to vector<16x128xf32>
    %88 = arith.subf %69, %87 : vector<16x128xf32>
    %cst_74 = arith.constant 9.99999974E-6 : f32
    %89 = vector.broadcast %cst_74 : f32 to vector<1x128xf32>
    %90 = arith.addf %86, %89 : vector<1x128xf32>
    %91 = math.rsqrt %90 : vector<1x128xf32>
    %92 = vector.broadcast %91 : vector<1x128xf32> to vector<16x128xf32>
    %93 = arith.mulf %88, %92 : vector<16x128xf32>
    %c0_75 = arith.constant 0 : index
    %c0_76 = arith.constant 0 : index
    %94 = vector.load %arg6[%c0_75, %c0_76] : memref<1x128xf32, #tpu.memory_space<vmem>>, vector<1x128xf32>
    %95 = vector.broadcast %94 : vector<1x128xf32> to vector<16x128xf32>
    %96 = arith.mulf %93, %95 : vector<16x128xf32>
    %c0_77 = arith.constant 0 : index
    %c0_78 = arith.constant 0 : index
    %97 = vector.load %arg7[%c0_77, %c0_78] : memref<1x128xf32, #tpu.memory_space<vmem>>, vector<1x128xf32>
    %98 = vector.broadcast %97 : vector<1x128xf32> to vector<16x128xf32>
    %99 = arith.addf %96, %98 : vector<16x128xf32>
    %cst_79 = arith.constant 0.000000e+00 : f32
    %100 = vector.broadcast %cst_79 : f32 to vector<16x128xf32>
    %101 = arith.cmpf oge, %99, %100 : vector<16x128xf32>
    %cst_80 = arith.constant 2.000000e-01 : f32
    %102 = vector.broadcast %cst_80 : f32 to vector<16x128xf32>
    %103 = arith.mulf %102, %99 : vector<16x128xf32>
    %104 = arith.select %101, %99, %103 : vector<16x128xi1>, vector<16x128xf32>
    %105 = arith.truncf %104 : vector<16x128xf32> to vector<16x128xbf16>
    %c0_81 = arith.constant 0 : index
    %c0_82 = arith.constant 0 : index
    %c0_83 = arith.constant 0 : index
    %106 = vector.load %arg8[%c0_81, %c0_82, %c0_83] : memref<4x8x16xbf16, #tpu.memory_space<vmem>>, vector<1x8x16xbf16>
    %107 = vector.shape_cast %106 : vector<1x8x16xbf16> to vector<8x16xbf16>
    %cst_84 = arith.constant dense<0.000000e+00> : vector<8x128xf32>
    %108 = tpu.matmul %107, %105, %cst_84 {dimension_numbers = #tpu.dot_dimension_numbers<[1], [0], [0], [1], [0, 0, 1, 1], [], []>} : vector<8x16xbf16>, vector<16x128xbf16>, vector<8x128xf32> -> vector<8x128xf32>
    %109 = arith.truncf %108 : vector<8x128xf32> to vector<8x128xbf16>
    %c0_85 = arith.constant 0 : index
    %c0_86 = arith.constant 0 : index
    %c0_87 = arith.constant 0 : index
    %110 = vector.load %arg9[%c0_85, %c0_86, %c0_87] : memref<4x128x128xbf16, #tpu.memory_space<vmem>>, vector<1x128x128xbf16>
    %111 = vector.shape_cast %110 : vector<1x128x128xbf16> to vector<128x128xbf16>
    %cst_88 = arith.constant dense<0.000000e+00> : vector<8x128xf32>
    %112 = tpu.matmul %109, %111, %cst_88 {dimension_numbers = #tpu.dot_dimension_numbers<[1], [0], [0], [1], [0, 0, 1, 1], [], []>} : vector<8x128xbf16>, vector<128x128xbf16>, vector<8x128xf32> -> vector<8x128xf32>
    %c1_89 = arith.constant 1 : index
    %c0_90 = arith.constant 0 : index
    %c0_91 = arith.constant 0 : index
    %113 = vector.load %arg8[%c1_89, %c0_90, %c0_91] : memref<4x8x16xbf16, #tpu.memory_space<vmem>>, vector<1x8x16xbf16>
    %114 = vector.shape_cast %113 : vector<1x8x16xbf16> to vector<8x16xbf16>
    %cst_92 = arith.constant dense<0.000000e+00> : vector<8x128xf32>
    %115 = tpu.matmul %114, %105, %cst_92 {dimension_numbers = #tpu.dot_dimension_numbers<[1], [0], [0], [1], [0, 0, 1, 1], [], []>} : vector<8x16xbf16>, vector<16x128xbf16>, vector<8x128xf32> -> vector<8x128xf32>
    %116 = arith.truncf %115 : vector<8x128xf32> to vector<8x128xbf16>
    %c1_93 = arith.constant 1 : index
    %c0_94 = arith.constant 0 : index
    %c0_95 = arith.constant 0 : index
    %117 = vector.load %arg9[%c1_93, %c0_94, %c0_95] : memref<4x128x128xbf16, #tpu.memory_space<vmem>>, vector<1x128x128xbf16>
    %118 = vector.shape_cast %117 : vector<1x128x128xbf16> to vector<128x128xbf16>
    %cst_96 = arith.constant dense<0.000000e+00> : vector<8x128xf32>
    %119 = tpu.matmul %116, %118, %cst_96 {dimension_numbers = #tpu.dot_dimension_numbers<[1], [0], [0], [1], [0, 0, 1, 1], [], []>} : vector<8x128xbf16>, vector<128x128xbf16>, vector<8x128xf32> -> vector<8x128xf32>
    %120 = arith.addf %112, %119 : vector<8x128xf32>
    %c2_97 = arith.constant 2 : index
    %c0_98 = arith.constant 0 : index
    %c0_99 = arith.constant 0 : index
    %121 = vector.load %arg8[%c2_97, %c0_98, %c0_99] : memref<4x8x16xbf16, #tpu.memory_space<vmem>>, vector<1x8x16xbf16>
    %122 = vector.shape_cast %121 : vector<1x8x16xbf16> to vector<8x16xbf16>
    %cst_100 = arith.constant dense<0.000000e+00> : vector<8x128xf32>
    %123 = tpu.matmul %122, %105, %cst_100 {dimension_numbers = #tpu.dot_dimension_numbers<[1], [0], [0], [1], [0, 0, 1, 1], [], []>} : vector<8x16xbf16>, vector<16x128xbf16>, vector<8x128xf32> -> vector<8x128xf32>
    %124 = arith.truncf %123 : vector<8x128xf32> to vector<8x128xbf16>
    %c2_101 = arith.constant 2 : index
    %c0_102 = arith.constant 0 : index
    %c0_103 = arith.constant 0 : index
    %125 = vector.load %arg9[%c2_101, %c0_102, %c0_103] : memref<4x128x128xbf16, #tpu.memory_space<vmem>>, vector<1x128x128xbf16>
    %126 = vector.shape_cast %125 : vector<1x128x128xbf16> to vector<128x128xbf16>
    %cst_104 = arith.constant dense<0.000000e+00> : vector<8x128xf32>
    %127 = tpu.matmul %124, %126, %cst_104 {dimension_numbers = #tpu.dot_dimension_numbers<[1], [0], [0], [1], [0, 0, 1, 1], [], []>} : vector<8x128xbf16>, vector<128x128xbf16>, vector<8x128xf32> -> vector<8x128xf32>
    %128 = arith.addf %120, %127 : vector<8x128xf32>
    %c3_105 = arith.constant 3 : index
    %c0_106 = arith.constant 0 : index
    %c0_107 = arith.constant 0 : index
    %129 = vector.load %arg8[%c3_105, %c0_106, %c0_107] : memref<4x8x16xbf16, #tpu.memory_space<vmem>>, vector<1x8x16xbf16>
    %130 = vector.shape_cast %129 : vector<1x8x16xbf16> to vector<8x16xbf16>
    %cst_108 = arith.constant dense<0.000000e+00> : vector<8x128xf32>
    %131 = tpu.matmul %130, %105, %cst_108 {dimension_numbers = #tpu.dot_dimension_numbers<[1], [0], [0], [1], [0, 0, 1, 1], [], []>} : vector<8x16xbf16>, vector<16x128xbf16>, vector<8x128xf32> -> vector<8x128xf32>
    %132 = arith.truncf %131 : vector<8x128xf32> to vector<8x128xbf16>
    %c3_109 = arith.constant 3 : index
    %c0_110 = arith.constant 0 : index
    %c0_111 = arith.constant 0 : index
    %133 = vector.load %arg9[%c3_109, %c0_110, %c0_111] : memref<4x128x128xbf16, #tpu.memory_space<vmem>>, vector<1x128x128xbf16>
    %134 = vector.shape_cast %133 : vector<1x128x128xbf16> to vector<128x128xbf16>
    %cst_112 = arith.constant dense<0.000000e+00> : vector<8x128xf32>
    %135 = tpu.matmul %132, %134, %cst_112 {dimension_numbers = #tpu.dot_dimension_numbers<[1], [0], [0], [1], [0, 0, 1, 1], [], []>} : vector<8x128xbf16>, vector<128x128xbf16>, vector<8x128xf32> -> vector<8x128xf32>
    %136 = arith.addf %128, %135 : vector<8x128xf32>
    %cst_113 = arith.constant dense<0.000000e+00> : vector<128xf32>
    %137 = vector.multi_reduction <add>, %136, %cst_113 [0] : vector<8x128xf32> to vector<128xf32>
    %138 = vector.shape_cast %137 : vector<128xf32> to vector<1x128xf32>
    %139 = arith.mulf %136, %136 : vector<8x128xf32>
    %cst_114 = arith.constant dense<0.000000e+00> : vector<128xf32>
    %140 = vector.multi_reduction <add>, %139, %cst_114 [0] : vector<8x128xf32> to vector<128xf32>
    %141 = vector.shape_cast %140 : vector<128xf32> to vector<1x128xf32>
    %c0_115 = arith.constant 0 : index
    %c0_116 = arith.constant 0 : index
    %142 = vector.load %arg10[%c0_115, %c0_116] : memref<128x128xf32, #tpu.memory_space<vmem>>, vector<128x128xf32>
    %cst_117 = arith.constant dense<0.000000e+00> : vector<1x128xf32>
    %143 = tpu.matmul %138, %142, %cst_117 {dimension_numbers = #tpu.dot_dimension_numbers<[1], [0], [0], [1], [0, 0, 1, 1], [], []>} : vector<1x128xf32>, vector<128x128xf32>, vector<1x128xf32> -> vector<1x128xf32>
    %cst_118 = arith.constant 3.125000e-02 : f32
    %144 = vector.broadcast %cst_118 : f32 to vector<1x128xf32>
    %145 = arith.mulf %143, %144 : vector<1x128xf32>
    %c0_119 = arith.constant 0 : index
    %c0_120 = arith.constant 0 : index
    %146 = vector.load %arg10[%c0_119, %c0_120] : memref<128x128xf32, #tpu.memory_space<vmem>>, vector<128x128xf32>
    %cst_121 = arith.constant dense<0.000000e+00> : vector<1x128xf32>
    %147 = tpu.matmul %141, %146, %cst_121 {dimension_numbers = #tpu.dot_dimension_numbers<[1], [0], [0], [1], [0, 0, 1, 1], [], []>} : vector<1x128xf32>, vector<128x128xf32>, vector<1x128xf32> -> vector<1x128xf32>
    %cst_122 = arith.constant 3.125000e-02 : f32
    %148 = vector.broadcast %cst_122 : f32 to vector<1x128xf32>
    %149 = arith.mulf %147, %148 : vector<1x128xf32>
    %150 = arith.mulf %145, %145 : vector<1x128xf32>
    %151 = arith.subf %149, %150 : vector<1x128xf32>
    %cst_123 = arith.constant 0.000000e+00 : f32
    %152 = vector.broadcast %cst_123 : f32 to vector<1x128xf32>
    %153 = arith.maximumf %151, %152 : vector<1x128xf32>
    %154 = vector.broadcast %145 : vector<1x128xf32> to vector<8x128xf32>
    %155 = arith.subf %136, %154 : vector<8x128xf32>
    %cst_124 = arith.constant 9.99999974E-6 : f32
    %156 = vector.broadcast %cst_124 : f32 to vector<1x128xf32>
    %157 = arith.addf %153, %156 : vector<1x128xf32>
    %158 = math.rsqrt %157 : vector<1x128xf32>
    %159 = vector.broadcast %158 : vector<1x128xf32> to vector<8x128xf32>
    %160 = arith.mulf %155, %159 : vector<8x128xf32>
    %c0_125 = arith.constant 0 : index
    %c0_126 = arith.constant 0 : index
    %161 = vector.load %arg11[%c0_125, %c0_126] : memref<1x128xf32, #tpu.memory_space<vmem>>, vector<1x128xf32>
    %162 = vector.broadcast %161 : vector<1x128xf32> to vector<8x128xf32>
    %163 = arith.mulf %160, %162 : vector<8x128xf32>
    %c0_127 = arith.constant 0 : index
    %c0_128 = arith.constant 0 : index
    %164 = vector.load %arg12[%c0_127, %c0_128] : memref<1x128xf32, #tpu.memory_space<vmem>>, vector<1x128xf32>
    %165 = vector.broadcast %164 : vector<1x128xf32> to vector<8x128xf32>
    %166 = arith.addf %163, %165 : vector<8x128xf32>
    %cst_129 = arith.constant 0.000000e+00 : f32
    %167 = vector.broadcast %cst_129 : f32 to vector<8x128xf32>
    %168 = arith.cmpf oge, %166, %167 : vector<8x128xf32>
    %cst_130 = arith.constant 2.000000e-01 : f32
    %169 = vector.broadcast %cst_130 : f32 to vector<8x128xf32>
    %170 = arith.mulf %169, %166 : vector<8x128xf32>
    %171 = arith.select %168, %166, %170 : vector<8x128xi1>, vector<8x128xf32>
    %172 = arith.truncf %171 : vector<8x128xf32> to vector<8x128xbf16>
    %c0_131 = arith.constant 0 : index
    %c0_132 = arith.constant 0 : index
    %c0_133 = arith.constant 0 : index
    %173 = vector.load %arg13[%c0_131, %c0_132, %c0_133] : memref<4x4x8xbf16, #tpu.memory_space<vmem>>, vector<1x4x8xbf16>
    %174 = vector.shape_cast %173 : vector<1x4x8xbf16> to vector<4x8xbf16>
    %cst_134 = arith.constant dense<0.000000e+00> : vector<4x128xf32>
    %175 = tpu.matmul %174, %172, %cst_134 {dimension_numbers = #tpu.dot_dimension_numbers<[1], [0], [0], [1], [0, 0, 1, 1], [], []>} : vector<4x8xbf16>, vector<8x128xbf16>, vector<4x128xf32> -> vector<4x128xf32>
    %176 = arith.truncf %175 : vector<4x128xf32> to vector<4x128xbf16>
    %c0_135 = arith.constant 0 : index
    %c0_136 = arith.constant 0 : index
    %c0_137 = arith.constant 0 : index
    %177 = vector.load %arg14[%c0_135, %c0_136, %c0_137] : memref<4x128x128xbf16, #tpu.memory_space<vmem>>, vector<1x128x128xbf16>
    %178 = vector.shape_cast %177 : vector<1x128x128xbf16> to vector<128x128xbf16>
    %cst_138 = arith.constant dense<0.000000e+00> : vector<4x128xf32>
    %179 = tpu.matmul %176, %178, %cst_138 {dimension_numbers = #tpu.dot_dimension_numbers<[1], [0], [0], [1], [0, 0, 1, 1], [], []>} : vector<4x128xbf16>, vector<128x128xbf16>, vector<4x128xf32> -> vector<4x128xf32>
    %c1_139 = arith.constant 1 : index
    %c0_140 = arith.constant 0 : index
    %c0_141 = arith.constant 0 : index
    %180 = vector.load %arg13[%c1_139, %c0_140, %c0_141] : memref<4x4x8xbf16, #tpu.memory_space<vmem>>, vector<1x4x8xbf16>
    %181 = vector.shape_cast %180 : vector<1x4x8xbf16> to vector<4x8xbf16>
    %cst_142 = arith.constant dense<0.000000e+00> : vector<4x128xf32>
    %182 = tpu.matmul %181, %172, %cst_142 {dimension_numbers = #tpu.dot_dimension_numbers<[1], [0], [0], [1], [0, 0, 1, 1], [], []>} : vector<4x8xbf16>, vector<8x128xbf16>, vector<4x128xf32> -> vector<4x128xf32>
    %183 = arith.truncf %182 : vector<4x128xf32> to vector<4x128xbf16>
    %c1_143 = arith.constant 1 : index
    %c0_144 = arith.constant 0 : index
    %c0_145 = arith.constant 0 : index
    %184 = vector.load %arg14[%c1_143, %c0_144, %c0_145] : memref<4x128x128xbf16, #tpu.memory_space<vmem>>, vector<1x128x128xbf16>
    %185 = vector.shape_cast %184 : vector<1x128x128xbf16> to vector<128x128xbf16>
    %cst_146 = arith.constant dense<0.000000e+00> : vector<4x128xf32>
    %186 = tpu.matmul %183, %185, %cst_146 {dimension_numbers = #tpu.dot_dimension_numbers<[1], [0], [0], [1], [0, 0, 1, 1], [], []>} : vector<4x128xbf16>, vector<128x128xbf16>, vector<4x128xf32> -> vector<4x128xf32>
    %187 = arith.addf %179, %186 : vector<4x128xf32>
    %c2_147 = arith.constant 2 : index
    %c0_148 = arith.constant 0 : index
    %c0_149 = arith.constant 0 : index
    %188 = vector.load %arg13[%c2_147, %c0_148, %c0_149] : memref<4x4x8xbf16, #tpu.memory_space<vmem>>, vector<1x4x8xbf16>
    %189 = vector.shape_cast %188 : vector<1x4x8xbf16> to vector<4x8xbf16>
    %cst_150 = arith.constant dense<0.000000e+00> : vector<4x128xf32>
    %190 = tpu.matmul %189, %172, %cst_150 {dimension_numbers = #tpu.dot_dimension_numbers<[1], [0], [0], [1], [0, 0, 1, 1], [], []>} : vector<4x8xbf16>, vector<8x128xbf16>, vector<4x128xf32> -> vector<4x128xf32>
    %191 = arith.truncf %190 : vector<4x128xf32> to vector<4x128xbf16>
    %c2_151 = arith.constant 2 : index
    %c0_152 = arith.constant 0 : index
    %c0_153 = arith.constant 0 : index
    %192 = vector.load %arg14[%c2_151, %c0_152, %c0_153] : memref<4x128x128xbf16, #tpu.memory_space<vmem>>, vector<1x128x128xbf16>
    %193 = vector.shape_cast %192 : vector<1x128x128xbf16> to vector<128x128xbf16>
    %cst_154 = arith.constant dense<0.000000e+00> : vector<4x128xf32>
    %194 = tpu.matmul %191, %193, %cst_154 {dimension_numbers = #tpu.dot_dimension_numbers<[1], [0], [0], [1], [0, 0, 1, 1], [], []>} : vector<4x128xbf16>, vector<128x128xbf16>, vector<4x128xf32> -> vector<4x128xf32>
    %195 = arith.addf %187, %194 : vector<4x128xf32>
    %c3_155 = arith.constant 3 : index
    %c0_156 = arith.constant 0 : index
    %c0_157 = arith.constant 0 : index
    %196 = vector.load %arg13[%c3_155, %c0_156, %c0_157] : memref<4x4x8xbf16, #tpu.memory_space<vmem>>, vector<1x4x8xbf16>
    %197 = vector.shape_cast %196 : vector<1x4x8xbf16> to vector<4x8xbf16>
    %cst_158 = arith.constant dense<0.000000e+00> : vector<4x128xf32>
    %198 = tpu.matmul %197, %172, %cst_158 {dimension_numbers = #tpu.dot_dimension_numbers<[1], [0], [0], [1], [0, 0, 1, 1], [], []>} : vector<4x8xbf16>, vector<8x128xbf16>, vector<4x128xf32> -> vector<4x128xf32>
    %199 = arith.truncf %198 : vector<4x128xf32> to vector<4x128xbf16>
    %c3_159 = arith.constant 3 : index
    %c0_160 = arith.constant 0 : index
    %c0_161 = arith.constant 0 : index
    %200 = vector.load %arg14[%c3_159, %c0_160, %c0_161] : memref<4x128x128xbf16, #tpu.memory_space<vmem>>, vector<1x128x128xbf16>
    %201 = vector.shape_cast %200 : vector<1x128x128xbf16> to vector<128x128xbf16>
    %cst_162 = arith.constant dense<0.000000e+00> : vector<4x128xf32>
    %202 = tpu.matmul %199, %201, %cst_162 {dimension_numbers = #tpu.dot_dimension_numbers<[1], [0], [0], [1], [0, 0, 1, 1], [], []>} : vector<4x128xbf16>, vector<128x128xbf16>, vector<4x128xf32> -> vector<4x128xf32>
    %203 = arith.addf %195, %202 : vector<4x128xf32>
    %cst_163 = arith.constant dense<0.000000e+00> : vector<128xf32>
    %204 = vector.multi_reduction <add>, %203, %cst_163 [0] : vector<4x128xf32> to vector<128xf32>
    %205 = vector.shape_cast %204 : vector<128xf32> to vector<1x128xf32>
    %206 = arith.mulf %203, %203 : vector<4x128xf32>
    %cst_164 = arith.constant dense<0.000000e+00> : vector<128xf32>
    %207 = vector.multi_reduction <add>, %206, %cst_164 [0] : vector<4x128xf32> to vector<128xf32>
    %208 = vector.shape_cast %207 : vector<128xf32> to vector<1x128xf32>
    %c0_165 = arith.constant 0 : index
    %c0_166 = arith.constant 0 : index
    %209 = vector.load %arg15[%c0_165, %c0_166] : memref<128x128xf32, #tpu.memory_space<vmem>>, vector<128x128xf32>
    %cst_167 = arith.constant dense<0.000000e+00> : vector<1x128xf32>
    %210 = tpu.matmul %205, %209, %cst_167 {dimension_numbers = #tpu.dot_dimension_numbers<[1], [0], [0], [1], [0, 0, 1, 1], [], []>} : vector<1x128xf32>, vector<128x128xf32>, vector<1x128xf32> -> vector<1x128xf32>
    %cst_168 = arith.constant 1.250000e-01 : f32
    %211 = vector.broadcast %cst_168 : f32 to vector<1x128xf32>
    %212 = arith.mulf %210, %211 : vector<1x128xf32>
    %c0_169 = arith.constant 0 : index
    %c0_170 = arith.constant 0 : index
    %213 = vector.load %arg15[%c0_169, %c0_170] : memref<128x128xf32, #tpu.memory_space<vmem>>, vector<128x128xf32>
    %cst_171 = arith.constant dense<0.000000e+00> : vector<1x128xf32>
    %214 = tpu.matmul %208, %213, %cst_171 {dimension_numbers = #tpu.dot_dimension_numbers<[1], [0], [0], [1], [0, 0, 1, 1], [], []>} : vector<1x128xf32>, vector<128x128xf32>, vector<1x128xf32> -> vector<1x128xf32>
    %cst_172 = arith.constant 1.250000e-01 : f32
    %215 = vector.broadcast %cst_172 : f32 to vector<1x128xf32>
    %216 = arith.mulf %214, %215 : vector<1x128xf32>
    %217 = arith.mulf %212, %212 : vector<1x128xf32>
    %218 = arith.subf %216, %217 : vector<1x128xf32>
    %cst_173 = arith.constant 0.000000e+00 : f32
    %219 = vector.broadcast %cst_173 : f32 to vector<1x128xf32>
    %220 = arith.maximumf %218, %219 : vector<1x128xf32>
    %221 = vector.broadcast %212 : vector<1x128xf32> to vector<4x128xf32>
    %222 = arith.subf %203, %221 : vector<4x128xf32>
    %cst_174 = arith.constant 9.99999974E-6 : f32
    %223 = vector.broadcast %cst_174 : f32 to vector<1x128xf32>
    %224 = arith.addf %220, %223 : vector<1x128xf32>
    %225 = math.rsqrt %224 : vector<1x128xf32>
    %226 = vector.broadcast %225 : vector<1x128xf32> to vector<4x128xf32>
    %227 = arith.mulf %222, %226 : vector<4x128xf32>
    %c0_175 = arith.constant 0 : index
    %c0_176 = arith.constant 0 : index
    %228 = vector.load %arg16[%c0_175, %c0_176] : memref<1x128xf32, #tpu.memory_space<vmem>>, vector<1x128xf32>
    %229 = vector.broadcast %228 : vector<1x128xf32> to vector<4x128xf32>
    %230 = arith.mulf %227, %229 : vector<4x128xf32>
    %c0_177 = arith.constant 0 : index
    %c0_178 = arith.constant 0 : index
    %231 = vector.load %arg17[%c0_177, %c0_178] : memref<1x128xf32, #tpu.memory_space<vmem>>, vector<1x128xf32>
    %232 = vector.broadcast %231 : vector<1x128xf32> to vector<4x128xf32>
    %233 = arith.addf %230, %232 : vector<4x128xf32>
    %cst_179 = arith.constant 0.000000e+00 : f32
    %234 = vector.broadcast %cst_179 : f32 to vector<4x128xf32>
    %235 = arith.cmpf oge, %233, %234 : vector<4x128xf32>
    %cst_180 = arith.constant 2.000000e-01 : f32
    %236 = vector.broadcast %cst_180 : f32 to vector<4x128xf32>
    %237 = arith.mulf %236, %233 : vector<4x128xf32>
    %238 = arith.select %235, %233, %237 : vector<4x128xi1>, vector<4x128xf32>
    %239 = arith.truncf %238 : vector<4x128xf32> to vector<4x128xbf16>
    %c0_181 = arith.constant 0 : index
    %c0_182 = arith.constant 0 : index
    %c0_183 = arith.constant 0 : index
    %240 = vector.load %arg18[%c0_181, %c0_182, %c0_183] : memref<4x2x4xbf16, #tpu.memory_space<vmem>>, vector<1x2x4xbf16>
    %241 = vector.shape_cast %240 : vector<1x2x4xbf16> to vector<2x4xbf16>
    %cst_184 = arith.constant dense<0.000000e+00> : vector<2x128xf32>
    %242 = tpu.matmul %241, %239, %cst_184 {dimension_numbers = #tpu.dot_dimension_numbers<[1], [0], [0], [1], [0, 0, 1, 1], [], []>} : vector<2x4xbf16>, vector<4x128xbf16>, vector<2x128xf32> -> vector<2x128xf32>
    %243 = arith.truncf %242 : vector<2x128xf32> to vector<2x128xbf16>
    %c0_185 = arith.constant 0 : index
    %c0_186 = arith.constant 0 : index
    %c0_187 = arith.constant 0 : index
    %244 = vector.load %arg19[%c0_185, %c0_186, %c0_187] : memref<4x128x1xbf16, #tpu.memory_space<vmem>>, vector<1x128x1xbf16>
    %245 = vector.shape_cast %244 : vector<1x128x1xbf16> to vector<128x1xbf16>
    %cst_188 = arith.constant dense<0.000000e+00> : vector<2x1xf32>
    %246 = tpu.matmul %243, %245, %cst_188 {dimension_numbers = #tpu.dot_dimension_numbers<[1], [0], [0], [1], [0, 0, 1, 1], [], []>} : vector<2x128xbf16>, vector<128x1xbf16>, vector<2x1xf32> -> vector<2x1xf32>
    %c1_189 = arith.constant 1 : index
    %c0_190 = arith.constant 0 : index
    %c0_191 = arith.constant 0 : index
    %247 = vector.load %arg18[%c1_189, %c0_190, %c0_191] : memref<4x2x4xbf16, #tpu.memory_space<vmem>>, vector<1x2x4xbf16>
    %248 = vector.shape_cast %247 : vector<1x2x4xbf16> to vector<2x4xbf16>
    %cst_192 = arith.constant dense<0.000000e+00> : vector<2x128xf32>
    %249 = tpu.matmul %248, %239, %cst_192 {dimension_numbers = #tpu.dot_dimension_numbers<[1], [0], [0], [1], [0, 0, 1, 1], [], []>} : vector<2x4xbf16>, vector<4x128xbf16>, vector<2x128xf32> -> vector<2x128xf32>
    %250 = arith.truncf %249 : vector<2x128xf32> to vector<2x128xbf16>
    %c1_193 = arith.constant 1 : index
    %c0_194 = arith.constant 0 : index
    %c0_195 = arith.constant 0 : index
    %251 = vector.load %arg19[%c1_193, %c0_194, %c0_195] : memref<4x128x1xbf16, #tpu.memory_space<vmem>>, vector<1x128x1xbf16>
    %252 = vector.shape_cast %251 : vector<1x128x1xbf16> to vector<128x1xbf16>
    %cst_196 = arith.constant dense<0.000000e+00> : vector<2x1xf32>
    %253 = tpu.matmul %250, %252, %cst_196 {dimension_numbers = #tpu.dot_dimension_numbers<[1], [0], [0], [1], [0, 0, 1, 1], [], []>} : vector<2x128xbf16>, vector<128x1xbf16>, vector<2x1xf32> -> vector<2x1xf32>
    %254 = arith.addf %246, %253 : vector<2x1xf32>
    %c2_197 = arith.constant 2 : index
    %c0_198 = arith.constant 0 : index
    %c0_199 = arith.constant 0 : index
    %255 = vector.load %arg18[%c2_197, %c0_198, %c0_199] : memref<4x2x4xbf16, #tpu.memory_space<vmem>>, vector<1x2x4xbf16>
    %256 = vector.shape_cast %255 : vector<1x2x4xbf16> to vector<2x4xbf16>
    %cst_200 = arith.constant dense<0.000000e+00> : vector<2x128xf32>
    %257 = tpu.matmul %256, %239, %cst_200 {dimension_numbers = #tpu.dot_dimension_numbers<[1], [0], [0], [1], [0, 0, 1, 1], [], []>} : vector<2x4xbf16>, vector<4x128xbf16>, vector<2x128xf32> -> vector<2x128xf32>
    %258 = arith.truncf %257 : vector<2x128xf32> to vector<2x128xbf16>
    %c2_201 = arith.constant 2 : index
    %c0_202 = arith.constant 0 : index
    %c0_203 = arith.constant 0 : index
    %259 = vector.load %arg19[%c2_201, %c0_202, %c0_203] : memref<4x128x1xbf16, #tpu.memory_space<vmem>>, vector<1x128x1xbf16>
    %260 = vector.shape_cast %259 : vector<1x128x1xbf16> to vector<128x1xbf16>
    %cst_204 = arith.constant dense<0.000000e+00> : vector<2x1xf32>
    %261 = tpu.matmul %258, %260, %cst_204 {dimension_numbers = #tpu.dot_dimension_numbers<[1], [0], [0], [1], [0, 0, 1, 1], [], []>} : vector<2x128xbf16>, vector<128x1xbf16>, vector<2x1xf32> -> vector<2x1xf32>
    %262 = arith.addf %254, %261 : vector<2x1xf32>
    %c3_205 = arith.constant 3 : index
    %c0_206 = arith.constant 0 : index
    %c0_207 = arith.constant 0 : index
    %263 = vector.load %arg18[%c3_205, %c0_206, %c0_207] : memref<4x2x4xbf16, #tpu.memory_space<vmem>>, vector<1x2x4xbf16>
    %264 = vector.shape_cast %263 : vector<1x2x4xbf16> to vector<2x4xbf16>
    %cst_208 = arith.constant dense<0.000000e+00> : vector<2x128xf32>
    %265 = tpu.matmul %264, %239, %cst_208 {dimension_numbers = #tpu.dot_dimension_numbers<[1], [0], [0], [1], [0, 0, 1, 1], [], []>} : vector<2x4xbf16>, vector<4x128xbf16>, vector<2x128xf32> -> vector<2x128xf32>
    %266 = arith.truncf %265 : vector<2x128xf32> to vector<2x128xbf16>
    %c3_209 = arith.constant 3 : index
    %c0_210 = arith.constant 0 : index
    %c0_211 = arith.constant 0 : index
    %267 = vector.load %arg19[%c3_209, %c0_210, %c0_211] : memref<4x128x1xbf16, #tpu.memory_space<vmem>>, vector<1x128x1xbf16>
    %268 = vector.shape_cast %267 : vector<1x128x1xbf16> to vector<128x1xbf16>
    %cst_212 = arith.constant dense<0.000000e+00> : vector<2x1xf32>
    %269 = tpu.matmul %266, %268, %cst_212 {dimension_numbers = #tpu.dot_dimension_numbers<[1], [0], [0], [1], [0, 0, 1, 1], [], []>} : vector<2x128xbf16>, vector<128x1xbf16>, vector<2x1xf32> -> vector<2x1xf32>
    %270 = arith.addf %262, %269 : vector<2x1xf32>
    %c0_213 = arith.constant 0 : index
    %c0_214 = arith.constant 0 : index
    %271 = vector.load %arg20[%c0_213, %c0_214] : memref<2x1xf32, #tpu.memory_space<vmem>>, vector<2x1xf32>
    tpu.vector_store %arg20[%c0_213, %c0_214], %270 {strides = array<i32>} : memref<2x1xf32, #tpu.memory_space<vmem>>, vector<2x1xf32>,
    return
  }
}

</mosaic_0001>

<bundles_post_ra>
// kernel: forward.1
= control target key start
LH: loop header
LB: loop body
LE: loop exit
PB: predicated region body
PF: predicated region fallthrough
CT: control target
= control target key end

     0   :  { %s7302_s0 = inlined_call_operand.vmem [shape: f32[64,128], index: 0, kind: input, shape index: {}]   ;;  %s7303_s1 = inlined_call_operand.hbm [shape: bf16[4,32,64], index: 1, kind: input, shape index: {}]   ;;  %s7304_s2 = inlined_call_operand.vmem [shape: bf16[4,128,128], index: 2, kind: input, shape index: {}]   ;;  %s7305_s3 = inlined_call_operand.hbm [shape: bf16[4,16,32], index: 3, kind: input, shape index: {}]   ;;  %s7306_s4 = inlined_call_operand.vmem [shape: bf16[4,128,128], index: 4, kind: input, shape index: {}]   ;;  %s7307_s5 = inlined_call_operand.vmem [shape: f32[128,128], index: 5, kind: input, shape index: {}]   ;;  %s7308_s6 = inlined_call_operand.vmem [shape: f32[1,128], index: 6, kind: input, shape index: {}, may-alias: {6,11,16}]   ;;  %s7309_s7 = inlined_call_operand.vmem [shape: f32[1,128], index: 7, kind: input, shape index: {}, may-alias: {7,12,17}]   ;;  %s7310_s8 = inlined_call_operand.hbm [shape: bf16[4,8,16], index: 8, kind: input, shape index: {}]   ;;  %s7311_s9 = inlined_call_operand.vmem [shape: bf16[4,128,128], index: 9, kind: input, shape index: {}]   ;;  %s7312_s10 = inlined_call_operand.hbm [shape: f32[128,128], index: 10, kind: input, shape index: {}]   ;;  %s7313_s11 = inlined_call_operand.vmem [shape: f32[1,128], index: 11, kind: input, shape index: {}, may-alias: {6,11,16}]   ;;  %s7314_s12 = inlined_call_operand.vmem [shape: f32[1,128], index: 12, kind: input, shape index: {}, may-alias: {7,12,17}]   ;;  %s7315_s13 = inlined_call_operand.hbm [shape: bf16[4,4,8], index: 13, kind: input, shape index: {}]   ;;  %s7316_s14 = inlined_call_operand.hbm [shape: bf16[4,128,128], index: 14, kind: input, shape index: {}]   ;;  %s7317_s15 = inlined_call_operand.hbm [shape: f32[128,128], index: 15, kind: input, shape index: {}]   ;;  %s7318_s16 = inlined_call_operand.vmem [shape: f32[1,128], index: 16, kind: input, shape index: {}, may-alias: {6,11,16}]   ;;  %s7319_s17 = inlined_call_operand.vmem [shape: f32[1,128], index: 17, kind: input, shape index: {}, may-alias: {7,12,17}]   ;;  %s7320_s18 = inlined_call_operand.hbm [shape: bf16[4,2,4], index: 18, kind: input, shape index: {}]   ;;  %s7321_s19 = inlined_call_operand.vmem [shape: bf16[4,128,1], index: 19, kind: input, shape index: {}]   ;;  %s7322_s20 = inlined_call_operand.vmem [shape: f32[2,1], index: 20, kind: output, shape index: {}]  }
   0x1   :  { %7333 = sst [smem:[#allocation20_spill]] %s7302_s0 }
   0x2   :  { %7334 = sst [smem:[#allocation21_spill]] %s7303_s1 }
   0x3   :  { %7335 = sst [smem:[#allocation22_spill]] %s7304_s2 }
   0x4   :  { %7336 = sst [smem:[#allocation23_spill]] %s7305_s3 }
   0x5   :  { %7337 = sst [smem:[#allocation24_spill]] %s7306_s4 }
   0x6   :  { %7338 = sst [smem:[#allocation25_spill]] %s7322_s20 }
   0x7   :  { %25 = vsyncpa [#allocation3], 0 }
   0x8   :  { %26 = vsyncpa [#allocation5], 0 }
   0x9   :  { %27 = vsyncpa [#allocation8], 0 }
   0xa   :  { %28 = vsyncpa [#allocation11], 0 }
   0xb   :  { %29 = vsyncpa [#allocation14], 0  ;;  %s6144_s1 = smov [#allocation4]   ;;  %s6145_s23 = smov [#allocation7]  }
   0xc   :  { %s51_s22 = sshll.u32 %s6144_s1, 4  ;;  %s85_s24 = sshll.u32 %s6145_s23, 4  ;;  %s52_s22 = int_to_ptr.vmem [resolvable:$true] %s51_s22  ;;  %s6268_s24 = int_to_ptr.vmem [resolvable:$true] %s85_s24 }
   0xd   :  { %s7339_s3 = sld [smem:[#allocation23_spill]] }
  0x13   :  { %s5958_s26 = scalar_lea.hbm %s7339_s3, 512 }
  0x14   :  { %p5959_p0 = scmp.ne.s32.totalorder %s7339_s3, %s5958_s26  ;;  %p5962_p1 = scmp.lt.u32.totalorder %s5958_s26, %s7339_s3 }
  0x16   :  { %p5964_p2 = pnand %p5962_p1, %p5959_p0 }
  0x18   :  { %5967 = shalt.err (!%p5964_p2)
}
  0x19   :  { %s5968_s30 = scalar_lea.vmem %s52_s22, 512  ;;  %p5973_p4 = scmp.lt.s32.totalorder %s52_s22, %s52_s22 }
  0x1a   :  { %p5969_p3 = scmp.ne.s32.totalorder %s52_s22, %s5968_s30  ;;  %p5974_p5 = scmp.lt.s32.totalorder %s5968_s30, %s5968_s30 }
  0x1c   :  { %p5975_p6 = por %p5974_p5, %p5973_p4 }
  0x1e   :  { %p5976_p7 = pnand %p5975_p6, %p5969_p3 }
  0x20   :  { %5979 = shalt.err (!%p5976_p7)
}
  0x21   :  { %s7328_s0 = smov 64   ;;  %s7330_s21 = smov 4  }
  0x22   :  { %57 = dma.hbm_to_vmem [thread:$0]  %s7339_s3, 512, %s52_s22, [#allocation5], %s7328_s0, %s7328_s0, %s7330_s21  }
  0x23   :  { %s5980_s26 = scalar_lea.hbm %s7312_s10, 2048 }
  0x24   :  { %p5981_p8 = scmp.ne.s32.totalorder %s7312_s10, %s5980_s26  ;;  %p5984_p9 = scmp.lt.u32.totalorder %s5980_s26, %s7312_s10 }
  0x26   :  { %p5986_p10 = pnand %p5984_p9, %p5981_p8 }
  0x28   :  { %5989 = shalt.err (!%p5986_p10)
}
  0x29   :  { %s5990_s30 = scalar_lea.vmem %s6268_s24, 2048  ;;  %p5995_p12 = scmp.lt.s32.totalorder %s6268_s24, %s6268_s24 }
  0x2a   :  { %p5991_p11 = scmp.ne.s32.totalorder %s6268_s24, %s5990_s30  ;;  %p5996_p13 = scmp.lt.s32.totalorder %s5990_s30, %s5990_s30 }
  0x2c   :  { %p5997_p0 = por %p5996_p13, %p5995_p12 }
  0x2e   :  { %p5998_p1 = pnand %p5997_p0, %p5991_p11 }
  0x30   :  { %6001 = shalt.err (!%p5998_p1)
}
  0x31   :  { %s7332_s22 = smov 128   ;;  %s6149_s3 = smov 8  }
  0x32   :  { %91 = dma.hbm_to_vmem [thread:$0]  %s7312_s10, 2048, %s6268_s24, [#allocation8], %s7332_s22, %s7332_s22, %s6149_s3  }
  0x33   :  { %s6150_s2 = smov [#allocation10]   ;;  %s6151_s26 = smov [#allocation2]  }
  0x34   :  { %s113_s25 = sshll.u32 %s6150_s2, 4  ;;  %s37_s27 = sshll.u32 %s6151_s26, 4  ;;  %s114_s25 = int_to_ptr.vmem [resolvable:$true] %s113_s25  ;;  %s6305_s27 = int_to_ptr.vmem [resolvable:$true] %s37_s27 }
  0x35   :  { %s6002_s29 = scalar_lea.hbm %s7316_s14, 4096 }
  0x36   :  { %p6003_p2 = scmp.ne.s32.totalorder %s7316_s14, %s6002_s29  ;;  %p6006_p3 = scmp.lt.u32.totalorder %s6002_s29, %s7316_s14 }
  0x38   :  { %p6008_p4 = pnand %p6006_p3, %p6003_p2 }
  0x3a   :  { %6011 = shalt.err (!%p6008_p4)
}
  0x3b   :  { %s6012_s10 = scalar_lea.vmem %s114_s25, 4096  ;;  %p6017_p6 = scmp.lt.s32.totalorder %s114_s25, %s114_s25 }
  0x3c   :  { %p6013_p5 = scmp.ne.s32.totalorder %s114_s25, %s6012_s10  ;;  %p6018_p7 = scmp.lt.s32.totalorder %s6012_s10, %s6012_s10 }
  0x3e   :  { %p6019_p8 = por %p6018_p7, %p6017_p6 }
  0x40   :  { %p6020_p9 = pnand %p6019_p8, %p6013_p5 }
  0x42   :  { %6023 = shalt.err (!%p6020_p9)
}
  0x43   :  { %s7340_s24 = smov 4   ;;  %s7341_s1 = smov 64  }
  0x44   :  { %119 = dma.hbm_to_vmem [thread:$0]  %s7316_s14, 4096, %s114_s25, [#allocation11], %s7341_s1, %s7341_s1, %s7340_s24  }
  0x45   :  { %s7342_s20 = sld [smem:[#allocation21_spill]] }
  0x4b   :  { %s6024_s21 = scalar_lea.hbm %s7342_s20, 1024 }
  0x4c   :  { %p6025_p10 = scmp.ne.s32.totalorder %s7342_s20, %s6024_s21  ;;  %p6028_p11 = scmp.lt.u32.totalorder %s6024_s21, %s7342_s20 }
  0x4e   :  { %p6030_p12 = pnand %p6028_p11, %p6025_p10 }
  0x50   :  { %6033 = shalt.err (!%p6030_p12)
}
  0x51   :  { %s6034_s10 = scalar_lea.vmem %s6305_s27, 1024  ;;  %p6039_p0 = scmp.lt.s32.totalorder %s6305_s27, %s6305_s27 }
  0x52   :  { %p6035_p13 = scmp.ne.s32.totalorder %s6305_s27, %s6034_s10  ;;  %p6040_p1 = scmp.lt.s32.totalorder %s6034_s10, %s6034_s10 }
  0x54   :  { %p6041_p2 = por %p6040_p1, %p6039_p0 }
  0x56   :  { %p6042_p3 = pnand %p6041_p2, %p6035_p13 }
  0x58   :  { %6045 = shalt.err (!%p6042_p3)
}
  0x59   :  { %43 = dma.hbm_to_vmem [thread:$0]  %s7342_s20, 1024, %s6305_s27, [#allocation3], %s7341_s1, %s7341_s1, %s7340_s24  }
  0x5a   :  { %s6152_s23 = smov [#allocation6]   ;;  %s6153_s0 = smov [#allocation9]  }
  0x5b   :  { %s71_s2 = sshll.u32 %s6152_s23, 4  ;;  %s101_s26 = sshll.u32 %s6153_s0, 4  ;;  %s72_s2 = int_to_ptr.vmem [resolvable:$true] %s71_s2  ;;  %s6342_s26 = int_to_ptr.vmem [resolvable:$true] %s101_s26 }
  0x5c   :  { %s6046_s4 = scalar_lea.hbm %s7310_s8, 256 }
  0x5d   :  { %p6047_p4 = scmp.ne.s32.totalorder %s7310_s8, %s6046_s4  ;;  %p6050_p5 = scmp.lt.u32.totalorder %s6046_s4, %s7310_s8 }
  0x5f   :  { %p6052_p6 = pnand %p6050_p5, %p6047_p4 }
  0x61   :  { %6055 = shalt.err (!%p6052_p6)
}
  0x62   :  { %s6056_s27 = scalar_lea.vmem %s72_s2, 256  ;;  %p6061_p8 = scmp.lt.s32.totalorder %s72_s2, %s72_s2 }
  0x63   :  { %p6057_p7 = scmp.ne.s32.totalorder %s72_s2, %s6056_s27  ;;  %p6062_p9 = scmp.lt.s32.totalorder %s6056_s27, %s6056_s27 }
  0x65   :  { %p6063_p10 = por %p6062_p9, %p6061_p8 }
  0x67   :  { %p6064_p11 = pnand %p6063_p10, %p6057_p7 }
  0x69   :  { %6067 = shalt.err (!%p6064_p11)
}
  0x6a   :  { %77 = dma.hbm_to_vmem [thread:$0]  %s7310_s8, 256, %s72_s2, [#allocation5], %s7341_s1, %s7341_s1, %s7340_s24  }
  0x6b   :  { %s6068_s22 = scalar_lea.hbm %s7315_s13, 128 }
  0x6c   :  { %p6069_p12 = scmp.ne.s32.totalorder %s7315_s13, %s6068_s22  ;;  %p6072_p13 = scmp.lt.u32.totalorder %s6068_s22, %s7315_s13 }
  0x6e   :  { %p6074_p0 = pnand %p6072_p13, %p6069_p12 }
  0x70   :  { %6077 = shalt.err (!%p6074_p0)
}
  0x71   :  { %s6078_s29 = scalar_lea.vmem %s6342_s26, 128  ;;  %p6083_p2 = scmp.lt.s32.totalorder %s6342_s26, %s6342_s26 }
  0x72   :  { %p6079_p1 = scmp.ne.s32.totalorder %s6342_s26, %s6078_s29  ;;  %p6084_p3 = scmp.lt.s32.totalorder %s6078_s29, %s6078_s29 }
  0x74   :  { %p6085_p4 = por %p6084_p3, %p6083_p2 }
  0x76   :  { %p6086_p5 = pnand %p6085_p4, %p6079_p1 }
  0x78   :  { %6089 = shalt.err (!%p6086_p5)
}
  0x79   :  { %s6154_s8 = smov 32   ;;  %s6155_s24 = smov 2  }
  0x7a   :  { %107 = dma.hbm_to_vmem [thread:$0]  %s7315_s13, 128, %s6342_s26, [#allocation8], %s6154_s8, %s6154_s8, %s6155_s24  }
  0x7b   :  { %s6156_s30 = smov [#allocation12]   ;;  %s6157_s27 = smov [#allocation13]  }
  0x7c   :  { %s125_s10 = sshll.u32 %s6156_s30, 4  ;;  %s141_s20 = sshll.u32 %s6157_s27, 4  ;;  %s126_s10 = int_to_ptr.vmem [resolvable:$true] %s125_s10  ;;  %s6376_s20 = int_to_ptr.vmem [resolvable:$true] %s141_s20 }
  0x7d   :  { %s6090_s23 = scalar_lea.hbm %s7317_s15, 2048 }
  0x7e   :  { %p6091_p6 = scmp.ne.s32.totalorder %s7317_s15, %s6090_s23  ;;  %p6094_p7 = scmp.lt.u32.totalorder %s6090_s23, %s7317_s15 }
  0x80   :  { %p6096_p8 = pnand %p6094_p7, %p6091_p6 }
  0x82   :  { %6099 = shalt.err (!%p6096_p8)
}
  0x83   :  { %s6100_s13 = scalar_lea.vmem %s126_s10, 2048  ;;  %p6105_p10 = scmp.lt.s32.totalorder %s126_s10, %s126_s10 }
  0x84   :  { %p6101_p9 = scmp.ne.s32.totalorder %s126_s10, %s6100_s13  ;;  %p6106_p11 = scmp.lt.s32.totalorder %s6100_s13, %s6100_s13 }
  0x86   :  { %p6107_p12 = por %p6106_p11, %p6105_p10 }
  0x88   :  { %p6108_p13 = pnand %p6107_p12, %p6101_p9 }
  0x8a   :  { %6111 = shalt.err (!%p6108_p13)
}
  0x8b   :  { %s7343_s26 = smov 128   ;;  %s6112_s1 = scalar_lea.hbm %s7320_s18, 64 }
  0x8c   :  { %131 = dma.hbm_to_vmem [thread:$0]  %s7317_s15, 2048, %s126_s10, [#allocation11], %s7343_s26, %s7343_s26, %s6149_s3  }
  0x8d   :  { %p6113_p0 = scmp.ne.s32.totalorder %s7320_s18, %s6112_s1  ;;  %p6116_p1 = scmp.lt.u32.totalorder %s6112_s1, %s7320_s18 }
  0x8f   :  { %p6118_p2 = pnand %p6116_p1, %p6113_p0 }
  0x91   :  { %6121 = shalt.err (!%p6118_p2)
}
  0x92   :  { %s6122_s25 = scalar_lea.vmem %s6376_s20, 64  ;;  %p6127_p4 = scmp.lt.s32.totalorder %s6376_s20, %s6376_s20 }
  0x93   :  { %p6123_p3 = scmp.ne.s32.totalorder %s6376_s20, %s6122_s25  ;;  %p6128_p5 = scmp.lt.s32.totalorder %s6122_s25, %s6122_s25 }
  0x95   :  { %p6129_p6 = por %p6128_p5, %p6127_p4 }
  0x97   :  { %p6130_p7 = pnand %p6129_p6, %p6123_p3 }
  0x99   :  { %6133 = shalt.err (!%p6130_p7)
}
  0x9a   :  { %s6158_s15 = smov 16   ;;  %s6159_s3 = smov 1  }
  0x9b   :  { %147 = dma.hbm_to_vmem [thread:$0]  %s7320_s18, 64, %s6376_s20, [#allocation14], %s6158_s15, %s6158_s15, %s6159_s3  }
  0x9c   :  { %6134 = dma.done.wait [#allocation3], 1024  }
  0x9d   :  { %6135 = vsyncadd [#allocation3], 4294966272 }
  0x9e   :  { %6136 = dma.done.wait [#allocation5], 768  }
  0x9f   :  { %6137 = vsyncadd [#allocation5], 4294966528 }
  0xa0   :  { %6138 = dma.done.wait [#allocation8], 2176  }
  0xa1   :  { %6139 = vsyncadd [#allocation8], 4294965120 }
  0xa2   :  { %6140 = dma.done.wait [#allocation11], 6144  }
  0xa3   :  { %6141 = vsyncadd [#allocation11], 4294961152 }
  0xa4   :  { %6142 = dma.done.wait [#allocation14], 64  }
  0xa5   :  { %6143 = vsyncadd [#allocation14], 4294967232  ;;  %s7344_s21 = sld [smem:[#allocation20_spill]]  ;;  %vm201_vm0 = vcmask 523264   ;;  %v5780_v8 = vld [vmem:[#allocation2 + $0x10] sm:$0xff]   ;;  %v5785_v12 = vld [vmem:[#allocation2] sm:$0xff]  }
  0xa6   :  { %4815 = vmatprep.mubr.msk.bf16.mxu1 %vm201_vm0, %v5780_v8  ;;  %4803 = vmatprep.mubr.msk.bf16.mxu0 %vm201_vm0, %v5785_v12  ;;  %s7345_s3 = sld [smem:[#allocation22_spill]]  ;;  %v5781_v15 = vld [vmem:[#allocation2 + $0x18] sm:$0xff]   ;;  %v5786_v16 = vld [vmem:[#allocation2 + $0x8] sm:$0xff]   ;;  %v5792_v44 = vld [vmem:[#allocation2 + $0x20] sm:$0xff]   ;;  %vm6161_vm1 = vmmov 0   ;;  %vm959_vm6 = vcmask 261120  }
  0xa7   :  { %v5793_v48 = vld [vmem:[#allocation2 + $0x28] sm:$0xff]   ;;  %v5794_v49 = vld [vmem:[#allocation2 + $0x30] sm:$0xff]   ;;  %v5795_v50 = vld [vmem:[#allocation2 + $0x38] sm:$0xff]   ;;  %s7346_s10 = sld [smem:[#allocation24_spill]]  ;;  %vm1808_vm9 = vcmask 130048   ;;  %vm2623_vm11 = vcmask 1043456  }
  0xa8   :  { %vm2619_vm12 = vcmask 64512   ;;  %vm3440_vm14 = vcmask 1041408   ;;  %vm3436_vm15 = vcmask 31744   ;;  %s7347_s29 = sld [smem:[#allocation25_spill]] }
  0xab   :  { %v175_v0 = vld [vmem:[%s7344_s21] sm:$0xff]  ;;  %v176_v1 = vld [vmem:[%s7344_s21 + $0x8] sm:$0xff]  ;;  %v177_v2 = vld [vmem:[%s7344_s21 + $0x10] sm:$0xff] }
  0xac   :  { %v6419_v3 = vpack.c.bf16 %v176_v1, %v175_v0  ;;  %v178_v4 = vld [vmem:[%s7344_s21 + $0x18] sm:$0xff]  ;;  %v179_v6 = vld [vmem:[%s7344_s21 + $0x20] sm:$0xff]  ;;  %v180_v7 = vld [vmem:[%s7344_s21 + $0x28] sm:$0xff] }
  0xad   :  { %v6424_v5 = vpack.c.bf16 %v178_v4, %v177_v2  ;;  %v6437_v9 = vpack.c.bf16 %v180_v7, %v179_v6  ;;  %v181_v10 = vld [vmem:[%s7344_s21 + $0x30] sm:$0xff]  ;;  %v182_v11 = vld [vmem:[%s7344_s21 + $0x38] sm:$0xff]  ;;  %v5782_v14 = vld [vmem:[%s7345_s3 + $0x40] sm:$0xff]  }
  0xae   :  { %4807 = vmatprep.subr.bf16.mxu1 %v6419_v3  ;;  %4795 = vmatprep.subr.bf16.mxu0 %v6419_v3  ;;  %v6450_v13 = vpack.c.bf16 %v182_v11, %v181_v10  ;;  %v5783_v17 = vld [vmem:[%s7345_s3 + $0x48] sm:$0xff]   ;;  %v5784_v18 = vld [vmem:[%s7345_s3 + $0x50] sm:$0xff]   ;;  %v5787_v19 = vld [vmem:[%s7345_s3 + $0x58] sm:$0xff]  }
  0xaf   :  { %4808 = vmatpush3.bf16.msra.mxu1 %v6419_v3  ;;  %4796 = vmatpush3.bf16.msra.mxu0 %v6419_v3  ;;  %v5788_v20 = vld [vmem:[%s7345_s3 + $0x60] sm:$0xff]   ;;  %v5789_v21 = vld [vmem:[%s7345_s3 + $0x68] sm:$0xff]   ;;  %v5790_v22 = vld [vmem:[%s7345_s3 + $0x70] sm:$0xff]  }
  0xb0   :  { %4809 = vmatprep.subr.bf16.mxu1 %v6424_v5  ;;  %4797 = vmatprep.subr.bf16.mxu0 %v6424_v5  ;;  %v5791_v23 = vld [vmem:[%s7345_s3 + $0x78] sm:$0xff]   ;;  %v5796_v24 = vld [vmem:[%s7345_s3] sm:$0xff]   ;;  %v5797_v25 = vld [vmem:[%s7345_s3 + $0x8] sm:$0xff]  }
  0xb1   :  { %v5798_v26 = vld [vmem:[%s7345_s3 + $0x10] sm:$0xff]   ;;  %v5799_v27 = vld [vmem:[%s7345_s3 + $0x18] sm:$0xff]   ;;  %v5800_v28 = vld [vmem:[%s7345_s3 + $0x20] sm:$0xff]  }
  0xb2   :  { %v5801_v29 = vld [vmem:[%s7345_s3 + $0x28] sm:$0xff]   ;;  %v5802_v30 = vld [vmem:[%s7345_s3 + $0x30] sm:$0xff]   ;;  %v5803_v31 = vld [vmem:[%s7345_s3 + $0x38] sm:$0xff]  }
  0xb3   :  { %4810 = vmatpush3.bf16.msra.mxu1 %v6424_v5  ;;  %4798 = vmatpush3.bf16.msra.mxu0 %v6424_v5  ;;  %v5804_v32 = vld [vmem:[%s7345_s3 + $0x80] sm:$0xff]   ;;  %v5805_v46 = vld [vmem:[%s7345_s3 + $0x88] sm:$0xff]   ;;  %v5806_v47 = vld [vmem:[%s7345_s3 + $0x90] sm:$0xff]  }
  0xb4   :  { %4811 = vmatprep.subr.bf16.mxu1 %v6437_v9  ;;  %4799 = vmatprep.subr.bf16.mxu0 %v6437_v9  ;;  %v5807_v51 = vld [vmem:[%s7345_s3 + $0x98] sm:$0xff]   ;;  %v5808_v52 = vld [vmem:[%s7345_s3 + $0xa0] sm:$0xff]   ;;  %v5809_v53 = vld [vmem:[%s7345_s3 + $0xa8] sm:$0xff]  }
  0xb5   :  { %v5810_v54 = vld [vmem:[%s7345_s3 + $0xb0] sm:$0xff]   ;;  %v5811_v55 = vld [vmem:[%s7345_s3 + $0xb8] sm:$0xff]   ;;  %v5812_v56 = vld [vmem:[%s7345_s3 + $0xc0] sm:$0xff]  }
  0xb6   :  { %v5814_v4 = vld [vmem:[%s7345_s3 + $0xd0] sm:$0xff]   ;;  %v5816_v7 = vld [vmem:[%s7345_s3 + $0xe0] sm:$0xff]  }
  0xb7   :  { %4812 = vmatpush3.bf16.msra.mxu1 %v6437_v9  ;;  %4800 = vmatpush3.bf16.msra.mxu0 %v6437_v9 }
  0xb8   :  { %4813 = vmatprep.subr.bf16.mxu1 %v6450_v13  ;;  %4801 = vmatprep.subr.bf16.mxu0 %v6450_v13 }
  0xbb   :  { %4814 = vmatpush3.bf16.msra.mxu1 %v6450_v13  ;;  %4802 = vmatpush3.bf16.msra.mxu0 %v6450_v13 }
  0xbc   :  { %4819 = vmatprep.subr.bf16.mxu1 %v5782_v14  ;;  %4839 = vmatprep.subr.bf16.mxu0 %v5796_v24 }
  0xbe   :  { %4816 = vmatmul.mubr.msk.bf16.vlgmr.msra.gmra.mrb[0].mxu1 %vm201_vm0, %v5781_v15  ;;  %4804 = vmatmul.mubr.msk.bf16.vlgmr.msra.gmra.mrb[0].mxu0 %vm201_vm0, %v5786_v16  ;;  %v5819_v15 = vld [vmem:[%s7345_s3 + $0xf8] sm:$0xff]   ;;  %v6160_v16 = vmov 0.0  }
  0xbf   :  { %4820 = vmatpush3.bf16.msra.mxu1 %v5782_v14  ;;  %4840 = vmatpush3.bf16.msra.mxu0 %v5796_v24  ;;  %v5818_v14 = vld [vmem:[%s7345_s3 + $0xf0] sm:$0xff]  }
  0xc0   :  { %4821 = vmatprep.subr.bf16.mxu1 %v5783_v17  ;;  %4841 = vmatprep.subr.bf16.mxu0 %v5797_v25 }
  0xc3   :  { %4822 = vmatpush3.bf16.msra.mxu1 %v5783_v17  ;;  %4842 = vmatpush3.bf16.msra.mxu0 %v5797_v25 }
  0xc4   :  { %4823 = vmatprep.subr.bf16.mxu1 %v5784_v18  ;;  %4843 = vmatprep.subr.bf16.mxu0 %v5798_v26 }
  0xc7   :  { %4824 = vmatpush3.bf16.msra.mxu1 %v5784_v18  ;;  %4844 = vmatpush3.bf16.msra.mxu0 %v5798_v26 }
  0xc8   :  { %4825 = vmatprep.subr.bf16.mxu1 %v5787_v19  ;;  %4845 = vmatprep.subr.bf16.mxu0 %v5799_v27 }
  0xcb   :  { %4826 = vmatpush3.bf16.msra.mxu1 %v5787_v19  ;;  %4846 = vmatpush3.bf16.msra.mxu0 %v5799_v27 }
  0xcc   :  { %4827 = vmatprep.subr.bf16.mxu1 %v5788_v20  ;;  %4847 = vmatprep.subr.bf16.mxu0 %v5800_v28 }
  0xcf   :  { %4828 = vmatpush3.bf16.msra.mxu1 %v5788_v20  ;;  %4848 = vmatpush3.bf16.msra.mxu0 %v5800_v28 }
  0xd0   :  { %4829 = vmatprep.subr.bf16.mxu1 %v5789_v21  ;;  %4849 = vmatprep.subr.bf16.mxu0 %v5801_v29 }
  0xd3   :  { %4830 = vmatpush3.bf16.msra.mxu1 %v5789_v21  ;;  %4850 = vmatpush3.bf16.msra.mxu0 %v5801_v29 }
  0xd4   :  { %4831 = vmatprep.subr.bf16.mxu1 %v5790_v22  ;;  %4851 = vmatprep.subr.bf16.mxu0 %v5802_v30 }
  0xd7   :  { %4832 = vmatpush3.bf16.msra.mxu1 %v5790_v22  ;;  %4852 = vmatpush3.bf16.msra.mxu0 %v5802_v30 }
  0xd8   :  { %4833 = vmatprep.subr.bf16.mxu1 %v5791_v23  ;;  %4853 = vmatprep.subr.bf16.mxu0 %v5803_v31 }
  0xdb   :  { %4834 = vmatpush3.bf16.msra.mxu1 %v5791_v23  ;;  %4854 = vmatpush3.bf16.msra.mxu0 %v5803_v31 }
  0xdc   :  { %4859 = vmatprep.subr.bf16.mxu1 %v6419_v3  ;;  %4871 = vmatprep.subr.bf16.mxu0 %v5804_v32 }
 0x191   :  { %v4817_v33 = vpop.f32.mrb[0].mxu1  ;;  %v4805_v34 = vpop.f32.mrb[0].mxu0 }
 0x192   :  { %v330_v35 = vpop.f32.mrb[1].mxu1  ;;  %v242_v36 = vpop.f32.mrb[1].mxu0 }
 0x193   :  { %v4818_v37 = vpop.f32.mrb[2].mxu1  ;;  %v4806_v38 = vpop.f32.mrb[2].mxu0 }
 0x194   :  { %v346_v39 = vpack.c.bf16 %v4818_v37, %v4817_v33  ;;  %v333_v40 = vpop.f32.mrb[3].mxu1  ;;  %v258_v41 = vpack.c.bf16 %v4806_v38, %v4805_v34  ;;  %v245_v42 = vpop.f32.mrb[3].mxu0  ;;  %v5822_v37 = vld [vmem:[%s7346_s10 + $0x40] sm:$0xff]   ;;  %v5823_v38 = vld [vmem:[%s7346_s10 + $0x48] sm:$0xff]  }
 0x195   :  { %v345_v43 = vpack.c.bf16 %v333_v40, %v330_v35  ;;  %v257_v45 = vpack.c.bf16 %v245_v42, %v242_v36  ;;  %v5820_v35 = vld [vmem:[#allocation4] sm:$0xff]   ;;  %v5821_v36 = vld [vmem:[#allocation4 + $0x8] sm:$0xff]   ;;  %v5825_v40 = vld [vmem:[%s7346_s10 + $0x58] sm:$0xff]  }
 0x196   :  { %v5827_v42 = vld [vmem:[%s7346_s10 + $0x68] sm:$0xff]  }
 0x197   :  { %4835 = vmatprep.mubr.bf16.mxu1 %v345_v43  ;;  %4855 = vmatprep.mubr.bf16.mxu0 %v257_v45  ;;  %v5828_v43 = vld [vmem:[%s7346_s10 + $0x70] sm:$0xff]   ;;  %v5839_v45 = vld [vmem:[#allocation4 + $0x18] sm:$0xff]  }
 0x198   :  { %4836 = vmatmul.mubr.bf16.vlgmr.msra.gmra.mrb[4].mxu1 %v346_v39  ;;  %4856 = vmatmul.mubr.bf16.vlgmr.msra.gmra.mrb[4].mxu0 %v258_v41  ;;  %v5824_v39 = vld [vmem:[%s7346_s10 + $0x50] sm:$0xff]   ;;  %v5826_v41 = vld [vmem:[%s7346_s10 + $0x60] sm:$0xff]  }
 0x199   :  { %4860 = vmatpush3.bf16.msra.mxu1 %v6419_v3  ;;  %4867 = vmatprep.mubr.msk.bf16.mxu1 %vm201_vm0, %v5792_v44  ;;  %v5829_v44 = vld [vmem:[%s7346_s10 + $0x78] sm:$0xff]  }
 0x19a   :  { %4861 = vmatprep.subr.bf16.mxu1 %v6424_v5  ;;  %4872 = vmatpush3.bf16.msra.mxu0 %v5804_v32 }
 0x19b   :  { %4873 = vmatprep.subr.bf16.mxu0 %v5805_v46 }
 0x19d   :  { %4862 = vmatpush3.bf16.msra.mxu1 %v6424_v5 }
 0x19e   :  { %4863 = vmatprep.subr.bf16.mxu1 %v6437_v9  ;;  %4874 = vmatpush3.bf16.msra.mxu0 %v5805_v46 }
 0x19f   :  { %4875 = vmatprep.subr.bf16.mxu0 %v5806_v47 }
 0x1a1   :  { %4864 = vmatpush3.bf16.msra.mxu1 %v6437_v9 }
 0x1a2   :  { %4865 = vmatprep.subr.bf16.mxu1 %v6450_v13  ;;  %4876 = vmatpush3.bf16.msra.mxu0 %v5806_v47 }
 0x1a3   :  { %4877 = vmatprep.subr.bf16.mxu0 %v5807_v51 }
 0x1a5   :  { %4866 = vmatpush3.bf16.msra.mxu1 %v6450_v13 }
 0x1a6   :  { %4891 = vmatprep.subr.bf16.mxu1 %v6419_v3  ;;  %4878 = vmatpush3.bf16.msra.mxu0 %v5807_v51 }
 0x1a7   :  { %4879 = vmatprep.subr.bf16.mxu0 %v5808_v52 }
 0x1a8   :  { %4868 = vmatmul.mubr.msk.bf16.vlgmr.msra.gmra.mrb[8].mxu1 %vm201_vm0, %v5793_v48 }
 0x1a9   :  { %4892 = vmatpush3.bf16.msra.mxu1 %v6419_v3  ;;  %4899 = vmatprep.mubr.msk.bf16.mxu1 %vm201_vm0, %v5794_v49  ;;  %v5813_v3 = vld [vmem:[%s7345_s3 + $0xc8] sm:$0xff]  }
 0x1aa   :  { %4893 = vmatprep.subr.bf16.mxu1 %v6424_v5  ;;  %4880 = vmatpush3.bf16.msra.mxu0 %v5808_v52 }
 0x1ab   :  { %4881 = vmatprep.subr.bf16.mxu0 %v5809_v53 }
 0x1ad   :  { %4894 = vmatpush3.bf16.msra.mxu1 %v6424_v5  ;;  %v5815_v5 = vld [vmem:[%s7345_s3 + $0xd8] sm:$0xff]  }
 0x1ae   :  { %4895 = vmatprep.subr.bf16.mxu1 %v6437_v9  ;;  %4882 = vmatpush3.bf16.msra.mxu0 %v5809_v53 }
 0x1af   :  { %4883 = vmatprep.subr.bf16.mxu0 %v5810_v54 }
 0x1b1   :  { %4896 = vmatpush3.bf16.msra.mxu1 %v6437_v9 }
 0x1b2   :  { %4897 = vmatprep.subr.bf16.mxu1 %v6450_v13  ;;  %4884 = vmatpush3.bf16.msra.mxu0 %v5810_v54  ;;  %v5830_v54 = vld [vmem:[%s7346_s10] sm:$0xff]  }
 0x1b3   :  { %4885 = vmatprep.subr.bf16.mxu0 %v5811_v55 }
 0x1b5   :  { %4898 = vmatpush3.bf16.msra.mxu1 %v6450_v13  ;;  %v5817_v13 = vld [vmem:[%s7345_s3 + $0xe8] sm:$0xff]  }
 0x1b6   :  { %4886 = vmatpush3.bf16.msra.mxu0 %v5811_v55  ;;  %4923 = vmatprep.subr.bf16.mxu1 %v6160_v16 }
 0x1b7   :  { %4903 = vmatprep.subr.bf16.mxu0 %v5812_v56 }
 0x1b8   :  { %4900 = vmatmul.mubr.msk.bf16.vlgmr.msra.gmra.mrb[12].mxu1 %vm201_vm0, %v5795_v50  ;;  %vm4044_vm0 = vcmask 1024  }
 0x1b9   :  { %4927 = vmatprep.mubr.msk.bf16.mxu1 %vm6161_vm1, %v6160_v16 }
 0x26b   :  { %v4837_v57 = vpop.f32.mrb[4].mxu1 }
 0x26c   :  { %v446_v58 = vpop.f32.mrb[5].mxu1 }
 0x26d   :  { %v4838_v59 = vpop.f32.mrb[6].mxu1 }
 0x26e   :  { %v449_v60 = vpop.f32.mrb[7].mxu1 }
 0x27b   :  { %v4869_v61 = vpop.f32.mrb[8].mxu1 }
 0x27c   :  { %v613_v62 = vpop.f32.mrb[9].mxu1 }
 0x27d   :  { %v4870_v63 = vpop.f32.mrb[10].mxu1 }
 0x27e   :  { %v629_v0 = vpack.c.bf16 %v4870_v63, %v4869_v61  ;;  %v616_v1 = vpop.f32.mrb[11].mxu1  ;;  %v5835_v61 = vld [vmem:[%s7346_s10 + $0x28] sm:$0xff]   ;;  %v5837_v63 = vld [vmem:[%s7346_s10 + $0x38] sm:$0xff]  }
 0x27f   :  { %v628_v2 = vpack.c.bf16 %v616_v1, %v613_v62  ;;  %v5836_v62 = vld [vmem:[%s7346_s10 + $0x30] sm:$0xff]   ;;  %v5840_v1 = vld [vmem:[%s7346_s10 + $0x80] sm:$0xff]  }
 0x281   :  { %4887 = vmatprep.mubr.bf16.mxu0 %v628_v2  ;;  %v5841_v2 = vld [vmem:[%s7346_s10 + $0x88] sm:$0xff]  }
 0x282   :  { %4888 = vmatmul.mubr.bf16.vlgmr.msra.gmra.mrb[4].mxu0 %v629_v0  ;;  %v5838_v0 = vld [vmem:[#allocation4 + $0x10] sm:$0xff]  }
 0x283   :  { %4904 = vmatpush3.bf16.msra.mxu0 %v5812_v56 }
 0x284   :  { %4905 = vmatprep.subr.bf16.mxu0 %v5813_v3 }
 0x287   :  { %4906 = vmatpush3.bf16.msra.mxu0 %v5813_v3  ;;  %v5842_v3 = vld [vmem:[%s7346_s10 + $0x90] sm:$0xff]  }
 0x288   :  { %4907 = vmatprep.subr.bf16.mxu0 %v5814_v4 }
 0x28b   :  { %4908 = vmatpush3.bf16.msra.mxu0 %v5814_v4  ;;  %v4901_v6 = vpop.f32.mrb[12].mxu1  ;;  %v5843_v4 = vld [vmem:[%s7346_s10 + $0x98] sm:$0xff]  }
 0x28c   :  { %4909 = vmatprep.subr.bf16.mxu0 %v5815_v5  ;;  %v803_v8 = vpop.f32.mrb[13].mxu1 }
 0x28d   :  { %v4902_v9 = vpop.f32.mrb[14].mxu1 }
 0x28e   :  { %v819_v10 = vpack.c.bf16 %v4902_v9, %v4901_v6  ;;  %v806_v11 = vpop.f32.mrb[15].mxu1  ;;  %v5845_v6 = vld [vmem:[%s7346_s10 + $0xa8] sm:$0xff]  }
 0x28f   :  { %4910 = vmatpush3.bf16.msra.mxu0 %v5815_v5  ;;  %v818_v12 = vpack.c.bf16 %v806_v11, %v803_v8  ;;  %v5844_v5 = vld [vmem:[%s7346_s10 + $0xa0] sm:$0xff]   ;;  %v5847_v8 = vld [vmem:[%s7346_s10 + $0xb8] sm:$0xff]  }
 0x290   :  { %4911 = vmatprep.subr.bf16.mxu0 %v5816_v7 }
 0x291   :  { %4919 = vmatprep.mubr.bf16.mxu0 %v818_v12 }
 0x293   :  { %4912 = vmatpush3.bf16.msra.mxu0 %v5816_v7  ;;  %v5846_v7 = vld [vmem:[%s7346_s10 + $0xb0] sm:$0xff]  }
 0x294   :  { %4913 = vmatprep.subr.bf16.mxu0 %v5817_v13 }
 0x297   :  { %4914 = vmatpush3.bf16.msra.mxu0 %v5817_v13 }
 0x298   :  { %4915 = vmatprep.subr.bf16.mxu0 %v5818_v14 }
 0x29b   :  { %4916 = vmatpush3.bf16.msra.mxu0 %v5818_v14  ;;  %v1607_v14 = vld [vmem:[%s7307_s5] sm:$0xff] }
 0x29c   :  { %4917 = vmatprep.subr.bf16.mxu0 %v5819_v15 }
 0x29f   :  { %4918 = vmatpush3.bf16.msra.mxu0 %v5819_v15  ;;  %v1608_v15 = vld [vmem:[%s7307_s5 + $0x8] sm:$0xff] }
 0x2a0   :  { %5007 = vmatprep.subr.bf16.mxu0 %v6160_v16 }
 0x2a2   :  { %4920 = vmatmul.mubr.bf16.vlgmr.msra.gmra.mrb[4].mxu0 %v819_v10 }
 0x2a3   :  { %5011 = vmatprep.mubr.msk.bf16.mxu0 %vm6161_vm1, %v6160_v16 }
 0x375   :  { %v4921_v17 = vpop.f32.mrb[4].mxu0 }
 0x376   :  { %v5701_v18 = vadd.f32 %v4921_v17, %v4837_v57  ;;  %v919_v19 = vpop.f32.mrb[5].mxu0  ;;  %v5831_v57 = vld [vmem:[%s7346_s10 + $0x8] sm:$0xff]   ;;  %v5558_v17 = vpack.c.bf16 %v1608_v15, %v1607_v14 }
 0x377   :  { %v5702_v20 = vadd.f32 %v919_v19, %v446_v58  ;;  %v4922_v21 = vpop.f32.mrb[6].mxu0  ;;  %v5832_v58 = vld [vmem:[%s7346_s10 + $0x10] sm:$0xff]  }
 0x378   :  { %v944_v22 = vmul.f32 0.2, %v5701_v18  ;;  %v5703_v23 = vadd.f32 %v4922_v21, %v4838_v59  ;;  %v922_v24 = vpop.f32.mrb[7].mxu0  ;;  %vm940_vm2 = vcmp.ge.f32.partialorder %v5701_v18, 0.0  ;;  %v5833_v59 = vld [vmem:[%s7346_s10 + $0x18] sm:$0xff]   ;;  %v1609_v19 = vld [vmem:[%s7307_s5 + $0x10] sm:$0xff] }
 0x379   :  { %v942_v25 = vmul.f32 0.2, %v5702_v20  ;;  %v5704_v26 = vadd.f32 %v922_v24, %v449_v60  ;;  %vm938_vm3 = vcmp.ge.f32.partialorder %v5702_v20, 0.0  ;;  %v5834_v60 = vld [vmem:[%s7346_s10 + $0x20] sm:$0xff]  }
 0x37a   :  { %vm941_vm4 = vcmp.ge.f32.partialorder %v5703_v23, 0.0  ;;  %v945_v27 = vmul.f32 0.2, %v5703_v23  ;;  %v948_v29 = vsel %vm940_vm2, %v5701_v18, %v944_v22  ;;  %v6162_v18 = vmov 0.0|0.0   ;;  %v1611_v22 = vld [vmem:[%s7307_s5 + $0x20] sm:$0xff] }
 0x37b   :  { %vm939_vm5 = vcmp.ge.f32.partialorder %v5704_v26, 0.0  ;;  %v943_v28 = vmul.f32 0.2, %v5704_v26  ;;  %v946_v31 = vsel %vm938_vm3, %v5702_v20, %v942_v25  ;;  %v1610_v20 = vld [vmem:[%s7307_s5 + $0x18] sm:$0xff]  ;;  %v1613_v25 = vld [vmem:[%s7307_s5 + $0x30] sm:$0xff] }
 0x37c   :  { %v949_v30 = vsel %vm941_vm4, %v5703_v23, %v945_v27  ;;  %v5561_v21 = vpack.c.bf16 %v1610_v20, %v1609_v19  ;;  %v1612_v23 = vld [vmem:[%s7307_s5 + $0x28] sm:$0xff] }
 0x37d   :  { %v6584_v32 = vpack.c.bf16 %v949_v30, %v948_v29  ;;  %v947_v33 = vsel %vm939_vm5, %v5704_v26, %v943_v28  ;;  %v5564_v24 = vpack.c.bf16 %v1612_v23, %v1611_v22  ;;  %v1614_v26 = vld [vmem:[%s7307_s5 + $0x38] sm:$0xff] }
 0x37e   :  { %v6586_v34 = vpack.c.bf16 %v947_v33, %v946_v31  ;;  %v5567_v27 = vpack.c.bf16 %v1614_v26, %v1613_v25  ;;  %v5848_v31 = vld [vmem:[%s7346_s10 + $0xc0] sm:$0xff]  }
 0x380   :  { %4924 = vmatpush3.bf16.msra.mxu1 %v6586_v34  ;;  %5008 = vmatpush3.bf16.msra.mxu0 %v6586_v34 }
 0x381   :  { %4925 = vmatprep.subr.bf16.mxu1 %v6160_v16  ;;  %5009 = vmatprep.subr.bf16.mxu0 %v6160_v16 }
 0x384   :  { %4926 = vmatpush3.bf16.msra.mxu1 %v6584_v32  ;;  %5010 = vmatpush3.bf16.msra.mxu0 %v6584_v32 }
 0x385   :  { %4931 = vmatprep.subr.bf16.mxu1 %v6160_v16  ;;  %5581 = vmatprep.subr.bf16.mxu0 %v6162_v18 }
 0x387   :  { %4928 = vmatmul.mubr.msk.bf16.vlgmr.msra.gmra.mrb[16].mxu1 %vm959_vm6, %v5820_v35  ;;  %5012 = vmatmul.mubr.msk.bf16.vlgmr.msra.gmra.mrb[8].mxu0 %vm959_vm6, %v5839_v45  ;;  %v5850_v35 = vld [vmem:[%s7346_s10 + $0xd0] sm:$0xff]   ;;  %v1618_v45 = vld [vmem:[%s7307_s5 + $0x58] sm:$0xff] }
 0x388   :  { %4932 = vmatpush3.bf16.msra.mxu1 %v6586_v34  ;;  %4935 = vmatprep.mubr.msk.bf16.mxu1 %vm6161_vm1, %v6160_v16 }
 0x389   :  { %4933 = vmatprep.subr.bf16.mxu1 %v6160_v16  ;;  %5102 = vmatprep.mubr.msk.f32.mxu0 %vm6161_vm1, %v6160_v16 }
 0x38a   :  { %5583 = vmatpush3.bf16.msra.mxu0 %v5558_v17 }
 0x38b   :  { %5584 = vmatprep.subr.bf16.mxu0 %v6162_v18 }
 0x38c   :  { %4934 = vmatpush3.bf16.msra.mxu1 %v6584_v32 }
 0x38d   :  { %4939 = vmatprep.subr.bf16.mxu1 %v6160_v16 }
 0x38e   :  { %5586 = vmatpush3.bf16.msra.mxu0 %v5561_v21 }
 0x38f   :  { %4936 = vmatmul.mubr.msk.bf16.vlgmr.msra.gmra.mrb[20].mxu1 %vm959_vm6, %v5821_v36  ;;  %5587 = vmatprep.subr.bf16.mxu0 %v6162_v18  ;;  %v5851_v36 = vld [vmem:[%s7346_s10 + $0xd8] sm:$0xff]  }
 0x390   :  { %4940 = vmatpush3.bf16.msra.mxu1 %v5822_v37  ;;  %4955 = vmatprep.mubr.msk.bf16.mxu1 %vm6161_vm1, %v6160_v16  ;;  %v5852_v37 = vld [vmem:[%s7346_s10 + $0xe0] sm:$0xff]  }
 0x391   :  { %4941 = vmatprep.subr.bf16.mxu1 %v6160_v16 }
 0x392   :  { %5589 = vmatpush3.bf16.msra.mxu0 %v5564_v24 }
 0x393   :  { %5590 = vmatprep.subr.bf16.mxu0 %v6162_v18 }
 0x394   :  { %4942 = vmatpush3.bf16.msra.mxu1 %v5823_v38  ;;  %v5853_v38 = vld [vmem:[%s7346_s10 + $0xe8] sm:$0xff]  }
 0x395   :  { %4943 = vmatprep.subr.bf16.mxu1 %v6160_v16 }
 0x396   :  { %5592 = vmatpush3.bf16.msra.mxu0 %v5567_v27 }
 0x397   :  { %5593 = vmatprep.subr.bf16.mxu0 %v6162_v18 }
 0x398   :  { %4944 = vmatpush3.bf16.msra.mxu1 %v5824_v39  ;;  %v5854_v39 = vld [vmem:[%s7346_s10 + $0xf0] sm:$0xff]  }
 0x399   :  { %4945 = vmatprep.subr.bf16.mxu1 %v6160_v16 }
 0x39c   :  { %4946 = vmatpush3.bf16.msra.mxu1 %v5825_v40  ;;  %v5855_v40 = vld [vmem:[%s7346_s10 + $0xf8] sm:$0xff]  }
 0x39d   :  { %4947 = vmatprep.subr.bf16.mxu1 %v6160_v16 }
 0x3a0   :  { %4948 = vmatpush3.bf16.msra.mxu1 %v5826_v41  ;;  %v1615_v41 = vld [vmem:[%s7307_s5 + $0x40] sm:$0xff] }
 0x3a1   :  { %4949 = vmatprep.subr.bf16.mxu1 %v6160_v16 }
 0x3a4   :  { %4950 = vmatpush3.bf16.msra.mxu1 %v5827_v42  ;;  %v1616_v42 = vld [vmem:[%s7307_s5 + $0x48] sm:$0xff] }
 0x3a5   :  { %4951 = vmatprep.subr.bf16.mxu1 %v6160_v16 }
 0x3a8   :  { %4952 = vmatpush3.bf16.msra.mxu1 %v5828_v43  ;;  %v5570_v43 = vpack.c.bf16 %v1616_v42, %v1615_v41  ;;  %v1870_v42 = vld [vmem:[#allocation6 + $0x4] sm:$0xf] }
 0x3a9   :  { %4953 = vmatprep.subr.bf16.mxu1 %v6160_v16 }
 0x3aa   :  { %5595 = vmatpush3.bf16.msra.mxu0 %v5570_v43 }
 0x3ab   :  { %5596 = vmatprep.subr.bf16.mxu0 %v6162_v18 }
 0x3ac   :  { %4954 = vmatpush3.bf16.msra.mxu1 %v5829_v44  ;;  %v1617_v44 = vld [vmem:[%s7307_s5 + $0x50] sm:$0xff] }
 0x3ad   :  { %4959 = vmatprep.subr.bf16.mxu1 %v6160_v16 }
 0x45a   :  { %v997_v46 = vpop.f32.mrb[16].mxu1  ;;  %v1475_v9 = vpop.f32.mrb[8].mxu0 }
 0x45b   :  { %v4929_v47 = vpop.f32.mrb[17].mxu1  ;;  %v5013_v10 = vpop.f32.mrb[9].mxu0 }
 0x45c   :  { %v1000_v48 = vpop.f32.mrb[18].mxu1  ;;  %v1478_v11 = vpop.f32.mrb[10].mxu0  ;;  %v1619_v47 = vld [vmem:[%s7307_s5 + $0x60] sm:$0xff] }
 0x45d   :  { %v1004_v49 = vpack.c.bf16 %v1000_v48, %v997_v46  ;;  %v4930_v50 = vpop.f32.mrb[19].mxu1  ;;  %v1482_v12 = vpack.c.bf16 %v1478_v11, %v1475_v9  ;;  %v5014_v13 = vpop.f32.mrb[11].mxu0  ;;  %v5573_v46 = vpack.c.bf16 %v1618_v45, %v1617_v44  ;;  %v1620_v48 = vld [vmem:[%s7307_s5 + $0x68] sm:$0xff]  ;;  %v1768_v9 = vlaneseq  ;;  %v5856_v44 = vld [vmem:[%s7311_s9 + $0x40] sm:$0xff]  }
 0x45e   :  { %v1621_v50 = vld [vmem:[%s7307_s5 + $0x70] sm:$0xff]  ;;  %v5857_v45 = vld [vmem:[%s7311_s9 + $0x48] sm:$0xff]  }
 0x45f   :  { %5598 = vmatpush3.bf16.msra.mxu0 %v5573_v46  ;;  %v1769_v10 = vshrl.u32 %v1768_v9, 7 }
 0x460   :  { %5599 = vmatprep.subr.bf16.mxu0 %v6162_v18 }
 0x461   :  { %v6820_v11 = vsub.s32 0, %v1769_v10 }
 0x462   :  { %v1066_v51 = vpop.f32.mrb[20].mxu1 }
 0x463   :  { %v4937_v52 = vpop.f32.mrb[21].mxu1 }
 0x464   :  { %v1069_v53 = vpop.f32.mrb[22].mxu1 }
 0x465   :  { %v1073_v55 = vpack.c.bf16 %v1069_v53, %v1066_v51  ;;  %v4938_v56 = vpop.f32.mrb[23].mxu1  ;;  %v1622_v51 = vld [vmem:[%s7307_s5 + $0x78] sm:$0xff] }
 0x466   :  { %v5579_v52 = vpack.c.bf16 %v1622_v51, %v1621_v50  ;;  %v5860_v50 = vld [vmem:[%s7311_s9 + $0x60] sm:$0xff]   ;;  %v5861_v51 = vld [vmem:[%s7311_s9 + $0x68] sm:$0xff]  }
 0x467   :  { %4956 = vmatmul.mubr.bf16.vlgmr.msra.gmra.mrb[24].mxu1 %v1073_v55 }
 0x468   :  { %4960 = vmatpush3.bf16.msra.mxu1 %v5830_v54  ;;  %4975 = vmatprep.mubr.msk.bf16.mxu1 %vm6161_vm1, %v6160_v16 }
 0x469   :  { %4961 = vmatprep.subr.bf16.mxu1 %v6160_v16 }
 0x46c   :  { %4962 = vmatpush3.bf16.msra.mxu1 %v5831_v57 }
 0x46d   :  { %4963 = vmatprep.subr.bf16.mxu1 %v6160_v16 }
 0x470   :  { %4964 = vmatpush3.bf16.msra.mxu1 %v5832_v58 }
 0x471   :  { %4965 = vmatprep.subr.bf16.mxu1 %v6160_v16 }
 0x474   :  { %4966 = vmatpush3.bf16.msra.mxu1 %v5833_v59 }
 0x475   :  { %4967 = vmatprep.subr.bf16.mxu1 %v6160_v16 }
 0x478   :  { %4968 = vmatpush3.bf16.msra.mxu1 %v5834_v60 }
 0x479   :  { %4969 = vmatprep.subr.bf16.mxu1 %v6160_v16 }
 0x47c   :  { %4970 = vmatpush3.bf16.msra.mxu1 %v5835_v61 }
 0x47d   :  { %4971 = vmatprep.subr.bf16.mxu1 %v6160_v16 }
 0x480   :  { %4972 = vmatpush3.bf16.msra.mxu1 %v5836_v62 }
 0x481   :  { %4973 = vmatprep.subr.bf16.mxu1 %v6160_v16 }
 0x484   :  { %4974 = vmatpush3.bf16.msra.mxu1 %v5837_v63 }
 0x485   :  { %4979 = vmatprep.subr.bf16.mxu1 %v6160_v16 }
 0x487   :  { %4976 = vmatmul.mubr.bf16.vlgmr.msra.gmra.mrb[24].mxu1 %v1004_v49  ;;  %v5576_v49 = vpack.c.bf16 %v1620_v48, %v1619_v47  ;;  %v5858_v47 = vld [vmem:[%s7311_s9 + $0x50] sm:$0xff]   ;;  %v5859_v48 = vld [vmem:[%s7311_s9 + $0x58] sm:$0xff]  }
 0x488   :  { %4980 = vmatpush3.bf16.msra.mxu1 %v6586_v34  ;;  %4983 = vmatprep.mubr.msk.bf16.mxu1 %vm6161_vm1, %v6160_v16  ;;  %v5849_v34 = vld [vmem:[%s7346_s10 + $0xc8] sm:$0xff]  }
 0x489   :  { %4981 = vmatprep.subr.bf16.mxu1 %v6160_v16  ;;  %5601 = vmatpush3.bf16.msra.mxu0 %v5576_v49 }
 0x48a   :  { %5602 = vmatprep.subr.bf16.mxu0 %v6162_v18 }
 0x48c   :  { %4982 = vmatpush3.bf16.msra.mxu1 %v6584_v32 }
 0x48d   :  { %4987 = vmatprep.subr.bf16.mxu1 %v6160_v16  ;;  %5604 = vmatpush3.bf16.msra.mxu0 %v5579_v52 }
 0x48e   :  { %5105 = vmatprep.subr.bf16.mxu0 %v6160_v16 }
 0x48f   :  { %4984 = vmatmul.mubr.msk.bf16.vlgmr.msra.gmra.mrb[28].mxu1 %vm959_vm6, %v5838_v0 }
 0x490   :  { %4988 = vmatpush3.bf16.msra.mxu1 %v5840_v1  ;;  %5003 = vmatprep.mubr.msk.bf16.mxu1 %vm6161_vm1, %v6160_v16 }
 0x491   :  { %4989 = vmatprep.subr.bf16.mxu1 %v6160_v16 }
 0x494   :  { %4990 = vmatpush3.bf16.msra.mxu1 %v5841_v2 }
 0x495   :  { %4991 = vmatprep.subr.bf16.mxu1 %v6160_v16 }
 0x498   :  { %4992 = vmatpush3.bf16.msra.mxu1 %v5842_v3 }
 0x499   :  { %4993 = vmatprep.subr.bf16.mxu1 %v6160_v16 }
 0x49c   :  { %4994 = vmatpush3.bf16.msra.mxu1 %v5843_v4 }
 0x49d   :  { %4995 = vmatprep.subr.bf16.mxu1 %v6160_v16 }
 0x4a0   :  { %4996 = vmatpush3.bf16.msra.mxu1 %v5844_v5 }
 0x4a1   :  { %4997 = vmatprep.subr.bf16.mxu1 %v6160_v16 }
 0x4a4   :  { %4998 = vmatpush3.bf16.msra.mxu1 %v5845_v6 }
 0x4a5   :  { %4999 = vmatprep.subr.bf16.mxu1 %v6160_v16 }
 0x4a8   :  { %5000 = vmatpush3.bf16.msra.mxu1 %v5846_v7 }
 0x4a9   :  { %5001 = vmatprep.subr.bf16.mxu1 %v6160_v16 }
 0x4ac   :  { %5002 = vmatpush3.bf16.msra.mxu1 %v5847_v8 }
 0x4ad   :  { %5015 = vmatprep.subr.bf16.mxu1 %v6160_v16 }
 0x562   :  { %v1314_v28 = vpop.f32.mrb[28].mxu1 }
 0x563   :  { %v4985_v29 = vpop.f32.mrb[29].mxu1 }
 0x564   :  { %v1317_v30 = vpop.f32.mrb[30].mxu1  ;;  %v4239_v29 = vld [vmem:[%s7308_s6] ss:$0 sm:$0xff] }
 0x565   :  { %v1321_v32 = vpack.c.bf16 %v1317_v30, %v1314_v28  ;;  %v4986_v33 = vpop.f32.mrb[31].mxu1 }
 0x567   :  { %5004 = vmatmul.mubr.bf16.vlgmr.msra.gmra.mrb[24].mxu1 %v1321_v32  ;;  %v4240_v32 = vld [vmem:[%s7309_s7] ss:$0 sm:$0xff] }
 0x568   :  { %5016 = vmatpush3.bf16.msra.mxu1 %v5848_v31  ;;  %5031 = vmatprep.mubr.msk.bf16.mxu1 %vm6161_vm1, %v6160_v16 }
 0x569   :  { %5017 = vmatprep.subr.bf16.mxu1 %v6160_v16 }
 0x56c   :  { %5018 = vmatpush3.bf16.msra.mxu1 %v5849_v34 }
 0x56d   :  { %5019 = vmatprep.subr.bf16.mxu1 %v6160_v16 }
 0x570   :  { %5020 = vmatpush3.bf16.msra.mxu1 %v5850_v35 }
 0x571   :  { %5021 = vmatprep.subr.bf16.mxu1 %v6160_v16 }
 0x574   :  { %5022 = vmatpush3.bf16.msra.mxu1 %v5851_v36 }
 0x575   :  { %5023 = vmatprep.subr.bf16.mxu1 %v6160_v16 }
 0x578   :  { %5024 = vmatpush3.bf16.msra.mxu1 %v5852_v37 }
 0x579   :  { %5025 = vmatprep.subr.bf16.mxu1 %v6160_v16 }
 0x57c   :  { %5026 = vmatpush3.bf16.msra.mxu1 %v5853_v38 }
 0x57d   :  { %5027 = vmatprep.subr.bf16.mxu1 %v6160_v16 }
 0x580   :  { %5028 = vmatpush3.bf16.msra.mxu1 %v5854_v39 }
 0x581   :  { %5029 = vmatprep.subr.bf16.mxu1 %v6160_v16 }
 0x584   :  { %5030 = vmatpush3.bf16.msra.mxu1 %v5855_v40 }
 0x585   :  { %5557 = vmatprep.subr.bf16.mxu1 %v6162_v18 }
 0x587   :  { %5032 = vmatmul.mubr.bf16.vlgmr.msra.gmra.mrb[24].mxu1 %v1482_v12 }
 0x588   :  { %5559 = vmatpush3.bf16.msra.mxu1 %v5558_v17  ;;  %5067 = vmatprep.mubr.msk.f32.mxu1 %vm6161_vm1, %v6160_v16 }
 0x589   :  { %5560 = vmatprep.subr.bf16.mxu1 %v6162_v18 }
 0x58c   :  { %5562 = vmatpush3.bf16.msra.mxu1 %v5561_v21 }
 0x58d   :  { %5563 = vmatprep.subr.bf16.mxu1 %v6162_v18 }
 0x590   :  { %5565 = vmatpush3.bf16.msra.mxu1 %v5564_v24 }
 0x591   :  { %5566 = vmatprep.subr.bf16.mxu1 %v6162_v18 }
 0x594   :  { %5568 = vmatpush3.bf16.msra.mxu1 %v5567_v27 }
 0x595   :  { %5569 = vmatprep.subr.bf16.mxu1 %v6162_v18 }
 0x598   :  { %5571 = vmatpush3.bf16.msra.mxu1 %v5570_v43  ;;  %v1807_v43 = vld [vmem:[#allocation6] sm:$0xf] }
 0x599   :  { %5572 = vmatprep.subr.bf16.mxu1 %v6162_v18 }
 0x59c   :  { %5574 = vmatpush3.bf16.msra.mxu1 %v5573_v46  ;;  %v2109_v46 = vld [vmem:[#allocation6 + $0x8] sm:$0xf] }
 0x59d   :  { %5575 = vmatprep.subr.bf16.mxu1 %v6162_v18 }
 0x5a0   :  { %5577 = vmatpush3.bf16.msra.mxu1 %v5576_v49  ;;  %v2261_v49 = vld [vmem:[#allocation6 + $0xc] sm:$0xf] }
 0x5a1   :  { %5578 = vmatprep.subr.bf16.mxu1 %v6162_v18 }
 0x5a4   :  { %5580 = vmatpush3.bf16.msra.mxu1 %v5579_v52  ;;  %v5862_v52 = vld [vmem:[%s7311_s9 + $0x70] sm:$0xff]  }
 0x5a5   :  { %5111 = vmatprep.subr.bf16.mxu1 %v6160_v16 }
 0x65a   :  { %v1582_v53 = vpop.f32.mrb[24].mxu1 }
 0x65b   :  { %v5033_v54 = vpop.f32.mrb[25].mxu1  ;;  %v1598_v56 = vmul.f32 %v1582_v53, %v1582_v53 }
 0x65c   :  { %v1585_v55 = vpop.f32.mrb[26].mxu1  ;;  %v2425_v54 = vld [vmem:[#allocation7] sm:$0xff] }
 0x65d   :  { %v1591_v57 = vadd.f32 %v1585_v55, %v1582_v53  ;;  %v1599_v58 = vmul.f32 %v1585_v55, %v1585_v55  ;;  %v5034_v59 = vpop.f32.mrb[27].mxu1 }
 0x65f   :  { %v1592_v60 = vrot.slane %v1591_v57, 4  ;;  %v1600_v61 = vadd.f32 %v1599_v58, %v1598_v56  ;;  %v2427_v56 = vld [vmem:[#allocation7 + $0x10] sm:$0xff]  ;;  %v2428_v58 = vld [vmem:[#allocation7 + $0x18] sm:$0xff] }
 0x660   :  { %v6881_v59 = vpack.c.bf16 %v2428_v58, %v2427_v56  ;;  %v2438_v56 = vld [vmem:[#allocation7 + $0x68] sm:$0xff] }
 0x661   :  { %v1593_v62 = vadd.f32 %v1592_v60, %v1591_v57  ;;  %v1601_v63 = vrot.slane %v1600_v61, 4  ;;  %v2429_v60 = vld [vmem:[#allocation7 + $0x20] sm:$0xff] }
 0x663   :  { %v1594_v0 = vrot.slane %v1593_v62, 2  ;;  %v1602_v1 = vadd.f32 %v1601_v63, %v1600_v61  ;;  %v2430_v61 = vld [vmem:[#allocation7 + $0x28] sm:$0xff]  ;;  %v2431_v63 = vld [vmem:[#allocation7 + $0x30] sm:$0xff] }
 0x665   :  { %v1595_v2 = vadd.f32 %v1594_v0, %v1593_v62  ;;  %v1603_v3 = vrot.slane %v1602_v1, 2  ;;  %v6885_v62 = vpack.c.bf16 %v2430_v61, %v2429_v60  ;;  %v2432_v0 = vld [vmem:[#allocation7 + $0x38] sm:$0xff]  ;;  %v2439_v60 = vld [vmem:[#allocation7 + $0x70] sm:$0xff] }
 0x666   :  { %v2440_v61 = vld [vmem:[#allocation7 + $0x78] sm:$0xff] }
 0x667   :  { %v1596_v4 = vrot.slane %v1595_v2, 1  ;;  %v1604_v5 = vadd.f32 %v1603_v3, %v1602_v1  ;;  %v6889_v1 = vpack.c.bf16 %v2432_v0, %v2431_v63  ;;  %v2434_v3 = vld [vmem:[#allocation7 + $0x48] sm:$0xff]  ;;  %v5627_v63 = vpack.c.bf16 %v2440_v61, %v2439_v60  ;;  %v3247_v61 = vld [vmem:[#allocation12 + $0x28] sm:$0xff] }
 0x668   :  { %v3246_v60 = vld [vmem:[#allocation12 + $0x20] sm:$0xff] }
 0x669   :  { %v1597_v6 = vadd.f32 %v1596_v4, %v1595_v2  ;;  %v1605_v7 = vrot.slane %v1604_v5, 1  ;;  %v2433_v2 = vld [vmem:[#allocation7 + $0x40] sm:$0xff] }
 0x66a   :  { %v6893_v4 = vpack.c.bf16 %v2434_v3, %v2433_v2 }
 0x66b   :  { %5068 = vmatmul.mubr.f32.vlgmr.msra.gmra.mrb[32].mxu1 %v1597_v6  ;;  %v1606_v8 = vadd.f32 %v1605_v7, %v1604_v5  ;;  %v5864_v6 = vld [vmem:[%s7311_s9] sm:$0xff]  }
 0x66c   :  { %5113 = vmatprep.mubr.msk.bf16.mxu1 %vm6161_vm1, %v6160_v16 }
 0x66d   :  { %5103 = vmatmul.mubr.f32.vlgmr.msra.gmra.mrb[12].mxu0 %v1606_v8 }
 0x66e   :  { %5107 = vmatprep.mubr.msk.bf16.mxu0 %vm6161_vm1, %v6160_v16 }
 0x73e   :  { %v1689_v12 = vpop.f32.mrb[32].mxu1 }
 0x73f   :  { %v1693_v13 = vmul.f32 0.0078125, %v1689_v12  ;;  %v5069_v14 = vpop.f32.mrb[33].mxu1 }
 0x740   :  { %v1760_v15 = vpop.f32.mrb[12].mxu0 }
 0x741   :  { %v1765_v17 = vmul.f32 %v1693_v13, %v1693_v13  ;;  %v1771_v19 = vrot.slane %v1693_v13, %v6820_v11  ;;  %v1764_v20 = vmul.f32 0.0078125, %v1760_v15  ;;  %v5104_v21 = vpop.f32.mrb[13].mxu0 }
 0x743   :  { %v1772_v22 = vsub.f32 %v1582_v53, %v1771_v19  ;;  %v1773_v23 = vsub.f32 %v1585_v55, %v1771_v19  ;;  %v1766_v24 = vsub.f32 %v1764_v20, %v1765_v17  ;;  %v5863_v53 = vld [vmem:[%s7311_s9 + $0x78] sm:$0xff]   ;;  %v5865_v17 = vld [vmem:[%s7311_s9 + $0x8] sm:$0xff]   ;;  %v5866_v19 = vld [vmem:[%s7311_s9 + $0x10] sm:$0xff]  }
 0x744   :  { %v2426_v55 = vld [vmem:[#allocation7 + $0x8] sm:$0xff] }
 0x745   :  { %v1767_v25 = vmax.f32 %v1766_v24, 0.0  ;;  %v6878_v57 = vpack.c.bf16 %v2426_v55, %v2425_v54  ;;  %v5867_v24 = vld [vmem:[%s7311_s9 + $0x18] sm:$0xff]   ;;  %v2437_v55 = vld [vmem:[#allocation7 + $0x60] sm:$0xff] }
 0x746   :  { %v5624_v58 = vpack.c.bf16 %v2438_v56, %v2437_v55  ;;  %v3245_v56 = vld [vmem:[#allocation12 + $0x18] sm:$0xff] }
 0x747   :  { %v1774_v26 = vadd.f32 1e-05, %v1767_v25  ;;  %v5868_v25 = vld [vmem:[%s7311_s9 + $0x20] sm:$0xff]  }
 0x749   :  { %5952 = vrsqrt.f32 %v1774_v26 }
 0x753   :  { %v5953_v27 = vpop.eup %5952 }
 0x754   :  { %v1779_v28 = vrot.slane %v5953_v27, %v6820_v11 }
 0x756   :  { %v1780_v30 = vmul.f32 %v1779_v28, %v1772_v22  ;;  %v1781_v31 = vmul.f32 %v1779_v28, %v1773_v23 }
 0x758   :  { %v1789_v33 = vmul.f32 %v4239_v29, %v1780_v30  ;;  %v1790_v34 = vmul.f32 %v4239_v29, %v1781_v31  ;;  %v5869_v30 = vld [vmem:[%s7311_s9 + $0x28] sm:$0xff]   ;;  %v5870_v31 = vld [vmem:[%s7311_s9 + $0x30] sm:$0xff]  }
 0x75a   :  { %v1798_v35 = vadd.f32 %v4240_v32, %v1789_v33  ;;  %v1799_v36 = vadd.f32 %v4240_v32, %v1790_v34  ;;  %v5871_v32 = vld [vmem:[%s7311_s9 + $0x38] sm:$0xff]   ;;  %v5872_v34 = vld [vmem:[%s7311_s9 + $0x80] sm:$0xff]  }
 0x75c   :  { %vm1800_vm7 = vcmp.ge.f32.partialorder %v1798_v35, 0.0  ;;  %vm1801_vm8 = vcmp.ge.f32.partialorder %v1799_v36, 0.0  ;;  %v1802_v37 = vmul.f32 0.2, %v1798_v35  ;;  %v1803_v38 = vmul.f32 0.2, %v1799_v36 }
 0x75e   :  { %v1804_v39 = vsel %vm1800_vm7, %v1798_v35, %v1802_v37  ;;  %v1805_v40 = vsel %vm1801_vm8, %v1799_v36, %v1803_v38  ;;  %v5873_v35 = vld [vmem:[%s7311_s9 + $0x88] sm:$0xff]   ;;  %v5874_v36 = vld [vmem:[%s7311_s9 + $0x90] sm:$0xff]   ;;  %v5875_v37 = vld [vmem:[%s7311_s9 + $0x98] sm:$0xff]  }
 0x75f   :  { %v1806_v41 = vpack.c.bf16 %v1805_v40, %v1804_v39  ;;  %v5876_v38 = vld [vmem:[%s7311_s9 + $0xa0] sm:$0xff]   ;;  %v5877_v39 = vld [vmem:[%s7311_s9 + $0xa8] sm:$0xff]   ;;  %v5878_v40 = vld [vmem:[%s7311_s9 + $0xb0] sm:$0xff]  }
 0x761   :  { %5106 = vmatpush3.bf16.msra.mxu0 %v1806_v41  ;;  %5112 = vmatpush3.bf16.msra.mxu1 %v1806_v41 }
 0x762   :  { %5157 = vmatprep.subr.bf16.mxu1 %v6160_v16  ;;  %5117 = vmatprep.subr.bf16.mxu0 %v6160_v16 }
 0x764   :  { %5114 = vmatmul.mubr.msk.bf16.vlgmr.msra.gmra.mrb[36].mxu1 %vm1808_vm9, %v1870_v42  ;;  %5108 = vmatmul.mubr.msk.bf16.vlgmr.msra.gmra.mrb[16].mxu0 %vm1808_vm9, %v1807_v43  ;;  %v5880_v43 = vld [vmem:[%s7311_s9 + $0xc0] sm:$0xff]  }
 0x765   :  { %5158 = vmatpush3.bf16.msra.mxu1 %v1806_v41  ;;  %5159 = vmatprep.mubr.msk.bf16.mxu1 %vm6161_vm1, %v6160_v16 }
 0x766   :  { %5183 = vmatprep.subr.bf16.mxu1 %v6160_v16  ;;  %5118 = vmatpush3.bf16.msra.mxu0 %v5856_v44  ;;  %v5881_v44 = vld [vmem:[%s7311_s9 + $0xc8] sm:$0xff]  }
 0x767   :  { %5119 = vmatprep.subr.bf16.mxu0 %v6160_v16  ;;  %5133 = vmatprep.mubr.msk.bf16.mxu0 %vm6161_vm1, %v6160_v16 }
 0x76a   :  { %5120 = vmatpush3.bf16.msra.mxu0 %v5857_v45  ;;  %v5882_v45 = vld [vmem:[%s7311_s9 + $0xd0] sm:$0xff]  }
 0x76b   :  { %5121 = vmatprep.subr.bf16.mxu0 %v6160_v16 }
 0x76c   :  { %5160 = vmatmul.mubr.msk.bf16.vlgmr.msra.gmra.mrb[40].mxu1 %vm1808_vm9, %v2109_v46  ;;  %v5883_v46 = vld [vmem:[%s7311_s9 + $0xd8] sm:$0xff]  }
 0x76d   :  { %5184 = vmatpush3.bf16.msra.mxu1 %v1806_v41  ;;  %5185 = vmatprep.mubr.msk.bf16.mxu1 %vm6161_vm1, %v6160_v16  ;;  %v5879_v41 = vld [vmem:[%s7311_s9 + $0xb8] sm:$0xff]  }
 0x76e   :  { %5122 = vmatpush3.bf16.msra.mxu0 %v5858_v47  ;;  %5605 = vmatprep.subr.bf16.mxu1 %v6162_v18  ;;  %v5884_v47 = vld [vmem:[%s7311_s9 + $0xe0] sm:$0xff]  }
 0x76f   :  { %5123 = vmatprep.subr.bf16.mxu0 %v6160_v16 }
 0x772   :  { %5124 = vmatpush3.bf16.msra.mxu0 %v5859_v48  ;;  %v5885_v48 = vld [vmem:[%s7311_s9 + $0xe8] sm:$0xff]  }
 0x773   :  { %5125 = vmatprep.subr.bf16.mxu0 %v6160_v16 }
 0x774   :  { %5186 = vmatmul.mubr.msk.bf16.vlgmr.msra.gmra.mrb[44].mxu1 %vm1808_vm9, %v2261_v49  ;;  %v5886_v49 = vld [vmem:[%s7311_s9 + $0xf0] sm:$0xff]  }
 0x775   :  { %5241 = vmatprep.mubr.msk.f32.mxu1 %vm6161_vm1, %v6160_v16  ;;  %5607 = vmatpush3.bf16.msra.mxu1 %v6878_v57 }
 0x776   :  { %5126 = vmatpush3.bf16.msra.mxu0 %v5860_v50  ;;  %5608 = vmatprep.subr.bf16.mxu1 %v6162_v18  ;;  %v5887_v50 = vld [vmem:[%s7311_s9 + $0xf8] sm:$0xff]  }
 0x777   :  { %5127 = vmatprep.subr.bf16.mxu0 %v6160_v16 }
 0x779   :  { %5610 = vmatpush3.bf16.msra.mxu1 %v6881_v59 }
 0x77a   :  { %5128 = vmatpush3.bf16.msra.mxu0 %v5861_v51  ;;  %5611 = vmatprep.subr.bf16.mxu1 %v6162_v18 }
 0x77b   :  { %5129 = vmatprep.subr.bf16.mxu0 %v6160_v16 }
 0x77d   :  { %5613 = vmatpush3.bf16.msra.mxu1 %v6885_v62 }
 0x77e   :  { %5130 = vmatpush3.bf16.msra.mxu0 %v5862_v52  ;;  %5614 = vmatprep.subr.bf16.mxu1 %v6162_v18  ;;  %v2435_v52 = vld [vmem:[#allocation7 + $0x50] sm:$0xff] }
 0x77f   :  { %5131 = vmatprep.subr.bf16.mxu0 %v6160_v16 }
 0x781   :  { %5616 = vmatpush3.bf16.msra.mxu1 %v6889_v1 }
 0x782   :  { %5132 = vmatpush3.bf16.msra.mxu0 %v5863_v53  ;;  %5617 = vmatprep.subr.bf16.mxu1 %v6162_v18  ;;  %v2436_v53 = vld [vmem:[#allocation7 + $0x58] sm:$0xff] }
 0x783   :  { %5137 = vmatprep.subr.bf16.mxu0 %v6160_v16  ;;  %v5621_v54 = vpack.c.bf16 %v2436_v53, %v2435_v52  ;;  %v3242_v52 = vld [vmem:[#allocation12] sm:$0xff]  ;;  %v3243_v53 = vld [vmem:[#allocation12 + $0x8] sm:$0xff] }
 0x784   :  { %v7059_v55 = vpack.c.bf16 %v3243_v53, %v3242_v52  ;;  %v3254_v53 = vld [vmem:[#allocation12 + $0x60] sm:$0xff] }
 0x785   :  { %5619 = vmatpush3.bf16.msra.mxu1 %v6893_v4 }
 0x786   :  { %5620 = vmatprep.subr.bf16.mxu1 %v6162_v18 }
 0x789   :  { %5622 = vmatpush3.bf16.msra.mxu1 %v5621_v54 }
 0x78a   :  { %5623 = vmatprep.subr.bf16.mxu1 %v6162_v18 }
 0x78d   :  { %5625 = vmatpush3.bf16.msra.mxu1 %v5624_v58 }
 0x78e   :  { %5626 = vmatprep.subr.bf16.mxu1 %v6162_v18 }
 0x791   :  { %5628 = vmatpush3.bf16.msra.mxu1 %v5627_v63 }
 0x792   :  { %5629 = vmatprep.subr.bf16.mxu1 %v6162_v18 }
 0x837   :  { %v1908_v5 = vpop.f32.mrb[36].mxu1  ;;  %v1846_v7 = vpop.f32.mrb[16].mxu0 }
 0x838   :  { %v1914_v8 = vpack.c.bf16 %v1908_v5, %v1908_v5  ;;  %v5115_v9 = vpop.f32.mrb[37].mxu1  ;;  %v5109_v10 = vpop.f32.mrb[17].mxu0  ;;  %v1852_v33 = vpack.c.bf16 %v1846_v7, %v1846_v7 }
 0x839   :  { %v1911_v12 = vpop.f32.mrb[38].mxu1  ;;  %v1849_v13 = vpop.f32.mrb[18].mxu0 }
 0x83a   :  { %v5116_v14 = vpop.f32.mrb[39].mxu1  ;;  %5134 = vmatmul.mubr.bf16.vlgmr.msra.gmra.mrb[20].mxu0 %v1914_v8  ;;  %v5110_v15 = vpop.f32.mrb[19].mxu0 }
 0x83b   :  { %5138 = vmatpush3.bf16.msra.mxu0 %v5864_v6  ;;  %5153 = vmatprep.mubr.msk.bf16.mxu0 %vm6161_vm1, %v6160_v16 }
 0x83c   :  { %5139 = vmatprep.subr.bf16.mxu0 %v6160_v16 }
 0x83f   :  { %5140 = vmatpush3.bf16.msra.mxu0 %v5865_v17  ;;  %v2147_v20 = vpop.f32.mrb[40].mxu1 }
 0x840   :  { %5141 = vmatprep.subr.bf16.mxu0 %v6160_v16  ;;  %v5161_v21 = vpop.f32.mrb[41].mxu1  ;;  %v2153_v42 = vpack.c.bf16 %v2147_v20, %v2147_v20 }
 0x841   :  { %v2150_v22 = vpop.f32.mrb[42].mxu1 }
 0x842   :  { %v5162_v23 = vpop.f32.mrb[43].mxu1 }
 0x843   :  { %5142 = vmatpush3.bf16.msra.mxu0 %v5866_v19 }
 0x844   :  { %5143 = vmatprep.subr.bf16.mxu0 %v6160_v16 }
 0x847   :  { %5144 = vmatpush3.bf16.msra.mxu0 %v5867_v24  ;;  %v6918_v26 = vpop.f32.mrb[44].mxu1 }
 0x848   :  { %5145 = vmatprep.subr.bf16.mxu0 %v6160_v16  ;;  %v5187_v27 = vpop.f32.mrb[45].mxu1  ;;  %v2305_v51 = vpack.c.bf16 %v6918_v26, %v6918_v26 }
 0x849   :  { %v2302_v28 = vpop.f32.mrb[46].mxu1 }
 0x84a   :  { %v5188_v29 = vpop.f32.mrb[47].mxu1 }
 0x84b   :  { %5146 = vmatpush3.bf16.msra.mxu0 %v5868_v25 }
 0x84c   :  { %5147 = vmatprep.subr.bf16.mxu0 %v6160_v16 }
 0x84f   :  { %5148 = vmatpush3.bf16.msra.mxu0 %v5869_v30 }
 0x850   :  { %5149 = vmatprep.subr.bf16.mxu0 %v6160_v16 }
 0x853   :  { %5150 = vmatpush3.bf16.msra.mxu0 %v5870_v31  ;;  %v4325_v31 = vld [vmem:[%s7313_s11] ss:$0 sm:$0xff] }
 0x854   :  { %5151 = vmatprep.subr.bf16.mxu0 %v6160_v16 }
 0x857   :  { %5152 = vmatpush3.bf16.msra.mxu0 %v5871_v32 }
 0x858   :  { %5163 = vmatprep.subr.bf16.mxu0 %v6160_v16 }
 0x85a   :  { %5154 = vmatmul.mubr.bf16.vlgmr.msra.gmra.mrb[20].mxu0 %v1852_v33  ;;  %v4326_v33 = vld [vmem:[%s7314_s12] ss:$0 sm:$0xff] }
 0x85b   :  { %5164 = vmatpush3.bf16.msra.mxu0 %v5872_v34  ;;  %5179 = vmatprep.mubr.msk.bf16.mxu0 %vm6161_vm1, %v6160_v16 }
 0x85c   :  { %5165 = vmatprep.subr.bf16.mxu0 %v6160_v16 }
 0x85f   :  { %5166 = vmatpush3.bf16.msra.mxu0 %v5873_v35 }
 0x860   :  { %5167 = vmatprep.subr.bf16.mxu0 %v6160_v16 }
 0x863   :  { %5168 = vmatpush3.bf16.msra.mxu0 %v5874_v36 }
 0x864   :  { %5169 = vmatprep.subr.bf16.mxu0 %v6160_v16 }
 0x867   :  { %5170 = vmatpush3.bf16.msra.mxu0 %v5875_v37 }
 0x868   :  { %5171 = vmatprep.subr.bf16.mxu0 %v6160_v16 }
 0x86b   :  { %5172 = vmatpush3.bf16.msra.mxu0 %v5876_v38 }
 0x86c   :  { %5173 = vmatprep.subr.bf16.mxu0 %v6160_v16 }
 0x86f   :  { %5174 = vmatpush3.bf16.msra.mxu0 %v5877_v39 }
 0x870   :  { %5175 = vmatprep.subr.bf16.mxu0 %v6160_v16 }
 0x873   :  { %5176 = vmatpush3.bf16.msra.mxu0 %v5878_v40  ;;  %v2618_v40 = vld [vmem:[#allocation9] sm:$0x3] }
 0x874   :  { %5177 = vmatprep.subr.bf16.mxu0 %v6160_v16 }
 0x877   :  { %5178 = vmatpush3.bf16.msra.mxu0 %v5879_v41  ;;  %v2924_v41 = vld [vmem:[#allocation9 + $0x4] sm:$0x3] }
 0x878   :  { %5189 = vmatprep.subr.bf16.mxu0 %v6160_v16 }
 0x87a   :  { %5180 = vmatmul.mubr.bf16.vlgmr.msra.gmra.mrb[20].mxu0 %v2153_v42  ;;  %v2685_v42 = vld [vmem:[#allocation9 + $0x2] sm:$0x3] }
 0x87b   :  { %5190 = vmatpush3.bf16.msra.mxu0 %v5880_v43  ;;  %5205 = vmatprep.mubr.msk.bf16.mxu0 %vm6161_vm1, %v6160_v16  ;;  %v3076_v43 = vld [vmem:[#allocation9 + $0x6] sm:$0x3] }
 0x87c   :  { %5191 = vmatprep.subr.bf16.mxu0 %v6160_v16 }
 0x87f   :  { %5192 = vmatpush3.bf16.msra.mxu0 %v5881_v44  ;;  %v5888_v44 = vld [vmem:[#allocation10 + $0x40] sm:$0xff]  }
 0x880   :  { %5193 = vmatprep.subr.bf16.mxu0 %v6160_v16 }
 0x883   :  { %5194 = vmatpush3.bf16.msra.mxu0 %v5882_v45  ;;  %v5889_v45 = vld [vmem:[#allocation10 + $0x48] sm:$0xff]  }
 0x884   :  { %5195 = vmatprep.subr.bf16.mxu0 %v6160_v16 }
 0x887   :  { %5196 = vmatpush3.bf16.msra.mxu0 %v5883_v46  ;;  %v5890_v46 = vld [vmem:[#allocation10 + $0x50] sm:$0xff]  }
 0x888   :  { %5197 = vmatprep.subr.bf16.mxu0 %v6160_v16 }
 0x88b   :  { %5198 = vmatpush3.bf16.msra.mxu0 %v5884_v47  ;;  %v5891_v47 = vld [vmem:[#allocation10 + $0x58] sm:$0xff]  }
 0x88c   :  { %5199 = vmatprep.subr.bf16.mxu0 %v6160_v16 }
 0x88f   :  { %5200 = vmatpush3.bf16.msra.mxu0 %v5885_v48  ;;  %v5892_v48 = vld [vmem:[#allocation10 + $0x60] sm:$0xff]  }
 0x890   :  { %5201 = vmatprep.subr.bf16.mxu0 %v6160_v16 }
 0x893   :  { %5202 = vmatpush3.bf16.msra.mxu0 %v5886_v49  ;;  %v5893_v49 = vld [vmem:[#allocation10 + $0x68] sm:$0xff]  }
 0x894   :  { %5203 = vmatprep.subr.bf16.mxu0 %v6160_v16 }
 0x897   :  { %5204 = vmatpush3.bf16.msra.mxu0 %v5887_v50  ;;  %v5894_v50 = vld [vmem:[#allocation10 + $0x70] sm:$0xff]  }
 0x898   :  { %5331 = vmatprep.subr.bf16.mxu0 %v6160_v16 }
 0x89a   :  { %5206 = vmatmul.mubr.bf16.vlgmr.msra.gmra.mrb[20].mxu0 %v2305_v51  ;;  %v5895_v51 = vld [vmem:[#allocation10 + $0x78] sm:$0xff]  }
 0x89b   :  { %5333 = vmatprep.mubr.msk.bf16.mxu0 %vm6161_vm1, %v6160_v16 }
 0x96d   :  { %v2405_v0 = vpop.f32.mrb[20].mxu0 }
 0x96e   :  { %v2412_v2 = vrot.slane %v2405_v0, 4  ;;  %v5207_v3 = vpop.f32.mrb[21].mxu0  ;;  %v2418_v13 = vmul.f32 %v2405_v0, %v2405_v0 }
 0x96f   :  { %v2408_v5 = vpop.f32.mrb[22].mxu0 }
 0x970   :  { %v2413_v6 = vadd.f32 %v2412_v2, %v2405_v0  ;;  %v5208_v7 = vpop.f32.mrb[23].mxu0  ;;  %v2419_v14 = vrot.slane %v2418_v13, 4  ;;  %v3249_v2 = vld [vmem:[#allocation12 + $0x38] sm:$0xff]  ;;  %v3250_v5 = vld [vmem:[#allocation12 + $0x40] sm:$0xff] }
 0x972   :  { %v2414_v8 = vrot.slane %v2413_v6, 2  ;;  %v2420_v15 = vadd.f32 %v2419_v14, %v2418_v13 }
 0x974   :  { %v2415_v9 = vadd.f32 %v2414_v8, %v2413_v6  ;;  %v3251_v6 = vld [vmem:[#allocation12 + $0x48] sm:$0xff] }
 0x975   :  { %v7074_v7 = vpack.c.bf16 %v3251_v6, %v3250_v5 }
 0x976   :  { %v2416_v10 = vrot.slane %v2415_v9, 1 }
 0x978   :  { %v2417_v12 = vadd.f32 %v2416_v10, %v2415_v9 }
 0x97a   :  { %5242 = vmatmul.mubr.f32.vlgmr.msra.gmra.mrb[34].mxu1 %v2417_v12 }
 0x97b   :  { %5631 = vmatpush3.bf16.msra.mxu1 %v6878_v57  ;;  %5276 = vmatprep.mubr.msk.f32.mxu1 %vm6161_vm1, %v6160_v16  ;;  %v2421_v57 = vrot.slane %v2420_v15, 2 }
 0x97c   :  { %5632 = vmatprep.subr.bf16.mxu1 %v6162_v18 }
 0x97f   :  { %5634 = vmatpush3.bf16.msra.mxu1 %v6881_v59  ;;  %v2422_v59 = vadd.f32 %v2421_v57, %v2420_v15 }
 0x980   :  { %5635 = vmatprep.subr.bf16.mxu1 %v6162_v18 }
 0x983   :  { %5637 = vmatpush3.bf16.msra.mxu1 %v6885_v62  ;;  %v2423_v62 = vrot.slane %v2422_v59, 1 }
 0x984   :  { %5638 = vmatprep.subr.bf16.mxu1 %v6162_v18 }
 0x985   :  { %v2424_v17 = vadd.f32 %v2423_v62, %v2422_v59  ;;  %v5896_v62 = vld [vmem:[#allocation10] sm:$0xff]  }
 0x987   :  { %5640 = vmatpush3.bf16.msra.mxu1 %v6889_v1 }
 0x988   :  { %5641 = vmatprep.subr.bf16.mxu1 %v6162_v18 }
 0x98b   :  { %5643 = vmatpush3.bf16.msra.mxu1 %v6893_v4 }
 0x98c   :  { %5644 = vmatprep.subr.bf16.mxu1 %v6162_v18 }
 0x98f   :  { %5646 = vmatpush3.bf16.msra.mxu1 %v5621_v54  ;;  %v3244_v54 = vld [vmem:[#allocation12 + $0x10] sm:$0xff] }
 0x990   :  { %5647 = vmatprep.subr.bf16.mxu1 %v6162_v18 }
 0x993   :  { %5649 = vmatpush3.bf16.msra.mxu1 %v5624_v58  ;;  %v7062_v58 = vpack.c.bf16 %v3245_v56, %v3244_v54  ;;  %v3255_v54 = vld [vmem:[#allocation12 + $0x68] sm:$0xff] }
 0x994   :  { %5650 = vmatprep.subr.bf16.mxu1 %v6162_v18  ;;  %v5672_v56 = vpack.c.bf16 %v3255_v54, %v3254_v53 }
 0x997   :  { %5652 = vmatpush3.bf16.msra.mxu1 %v5627_v63  ;;  %v7066_v63 = vpack.c.bf16 %v3247_v61, %v3246_v60  ;;  %v3256_v60 = vld [vmem:[#allocation12 + $0x70] sm:$0xff]  ;;  %v3257_v61 = vld [vmem:[#allocation12 + $0x78] sm:$0xff] }
 0x998   :  { %5279 = vmatprep.subr.bf16.mxu1 %v6160_v16 }
 0x99a   :  { %5277 = vmatmul.mubr.f32.vlgmr.msra.gmra.mrb[48].mxu1 %v2424_v17 }
 0x99b   :  { %5281 = vmatprep.mubr.msk.bf16.mxu1 %vm6161_vm1, %v6160_v16 }
 0xa4d   :  { %v2507_v1 = vpop.f32.mrb[34].mxu1 }
 0xa4e   :  { %v2511_v4 = vmul.f32 0.03125, %v2507_v1  ;;  %v5243_v19 = vpop.f32.mrb[35].mxu1 }
 0xa50   :  { %v2589_v20 = vrot.slane %v2511_v4, %v6820_v11  ;;  %v2583_v23 = vmul.f32 %v2511_v4, %v2511_v4 }
 0xa52   :  { %v2590_v21 = vsub.f32 %v2405_v0, %v2589_v20  ;;  %v3248_v0 = vld [vmem:[#allocation12 + $0x30] sm:$0xff] }
 0xa53   :  { %v7070_v3 = vpack.c.bf16 %v3249_v2, %v3248_v0  ;;  %v5675_v0 = vpack.c.bf16 %v3257_v61, %v3256_v60 }
 0xa6d   :  { %v2578_v22 = vpop.f32.mrb[48].mxu1 }
 0xa6e   :  { %v2582_v24 = vmul.f32 0.03125, %v2578_v22  ;;  %v5278_v25 = vpop.f32.mrb[49].mxu1 }
 0xa6f   :  { %v5898_v25 = vld [vmem:[#allocation10 + $0x10] sm:$0xff]  }
 0xa70   :  { %v2584_v26 = vsub.f32 %v2582_v24, %v2583_v23  ;;  %v5897_v24 = vld [vmem:[#allocation10 + $0x8] sm:$0xff]  }
 0xa72   :  { %v2585_v27 = vmax.f32 %v2584_v26, 0.0  ;;  %v5899_v26 = vld [vmem:[#allocation10 + $0x18] sm:$0xff]  }
 0xa74   :  { %v2591_v28 = vadd.f32 1e-05, %v2585_v27  ;;  %v5900_v27 = vld [vmem:[#allocation10 + $0x20] sm:$0xff]  }
 0xa76   :  { %5954 = vrsqrt.f32 %v2591_v28  ;;  %v5901_v28 = vld [vmem:[#allocation10 + $0x28] sm:$0xff]  }
 0xa80   :  { %v5955_v29 = vpop.eup %5954 }
 0xa81   :  { %v2596_v30 = vrot.slane %v5955_v29, %v6820_v11  ;;  %v5902_v29 = vld [vmem:[#allocation10 + $0x30] sm:$0xff]  }
 0xa83   :  { %v2597_v32 = vmul.f32 %v2596_v30, %v2590_v21  ;;  %v5903_v30 = vld [vmem:[#allocation10 + $0x38] sm:$0xff]  }
 0xa85   :  { %v2605_v34 = vmul.f32 %v4325_v31, %v2597_v32  ;;  %v5904_v31 = vld [vmem:[#allocation10 + $0x80] sm:$0xff]  }
 0xa87   :  { %v2613_v35 = vadd.f32 %v4326_v33, %v2605_v34  ;;  %v5905_v33 = vld [vmem:[#allocation10 + $0x88] sm:$0xff]   ;;  %v5906_v34 = vld [vmem:[#allocation10 + $0x90] sm:$0xff]  }
 0xa89   :  { %vm2614_vm10 = vcmp.ge.f32.partialorder %v2613_v35, 0.0  ;;  %v2615_v36 = vmul.f32 0.2, %v2613_v35 }
 0xa8b   :  { %v2616_v37 = vsel %vm2614_vm10, %v2613_v35, %v2615_v36  ;;  %v5907_v35 = vld [vmem:[#allocation10 + $0x98] sm:$0xff]   ;;  %v5908_v36 = vld [vmem:[#allocation10 + $0xa0] sm:$0xff]  }
 0xa8c   :  { %v2617_v38 = vpack.c.bf16 %v2616_v37, %v2616_v37  ;;  %v5909_v37 = vld [vmem:[#allocation10 + $0xa8] sm:$0xff]  }
 0xa8e   :  { %v2625_v39 = vsel %vm2623_vm11, %v2617_v38, 0  ;;  %v5910_v38 = vld [vmem:[#allocation10 + $0xb0] sm:$0xff]  }
 0xa8f   :  { %5280 = vmatpush3.bf16.msra.mxu1 %v2625_v39  ;;  %5332 = vmatpush3.bf16.msra.mxu0 %v2625_v39 }
 0xa90   :  { %5285 = vmatprep.subr.bf16.mxu1 %v6160_v16  ;;  %5357 = vmatprep.subr.bf16.mxu0 %v6160_v16 }
 0xa92   :  { %5282 = vmatmul.mubr.msk.bf16.vlgmr.msra.gmra.mrb[52].mxu1 %vm2619_vm12, %v2618_v40  ;;  %5334 = vmatmul.mubr.msk.bf16.vlgmr.msra.gmra.mrb[24].mxu0 %vm2619_vm12, %v2924_v41  ;;  %v5912_v41 = vld [vmem:[#allocation10 + $0xc0] sm:$0xff]  }
 0xa93   :  { %5286 = vmatpush3.bf16.msra.mxu1 %v2625_v39  ;;  %5358 = vmatpush3.bf16.msra.mxu0 %v2625_v39  ;;  %v5911_v39 = vld [vmem:[#allocation10 + $0xb8] sm:$0xff]  }
 0xa94   :  { %5287 = vmatprep.mubr.msk.bf16.mxu1 %vm6161_vm1, %v6160_v16  ;;  %5359 = vmatprep.mubr.msk.bf16.mxu0 %vm6161_vm1, %v6160_v16 }
 0xa95   :  { %5291 = vmatprep.subr.bf16.mxu1 %v6160_v16  ;;  %5653 = vmatprep.subr.bf16.mxu0 %v6162_v18 }
 0xa9a   :  { %5288 = vmatmul.mubr.msk.bf16.vlgmr.msra.gmra.mrb[56].mxu1 %vm2619_vm12, %v2685_v42  ;;  %5360 = vmatmul.mubr.msk.bf16.vlgmr.msra.gmra.mrb[28].mxu0 %vm2619_vm12, %v3076_v43  ;;  %v5913_v42 = vld [vmem:[#allocation10 + $0xc8] sm:$0xff]   ;;  %v5914_v43 = vld [vmem:[#allocation10 + $0xd0] sm:$0xff]  }
 0xa9b   :  { %5292 = vmatpush3.bf16.msra.mxu1 %v5888_v44  ;;  %5307 = vmatprep.mubr.msk.bf16.mxu1 %vm6161_vm1, %v6160_v16  ;;  %v5915_v44 = vld [vmem:[#allocation10 + $0xd8] sm:$0xff]  }
 0xa9c   :  { %5293 = vmatprep.subr.bf16.mxu1 %v6160_v16  ;;  %5415 = vmatprep.mubr.msk.f32.mxu0 %vm6161_vm1, %v6160_v16 }
 0xa9d   :  { %5655 = vmatpush3.bf16.msra.mxu0 %v7059_v55 }
 0xa9e   :  { %5656 = vmatprep.subr.bf16.mxu0 %v6162_v18 }
 0xa9f   :  { %5294 = vmatpush3.bf16.msra.mxu1 %v5889_v45  ;;  %v5916_v45 = vld [vmem:[#allocation10 + $0xe0] sm:$0xff]  }
 0xaa0   :  { %5295 = vmatprep.subr.bf16.mxu1 %v6160_v16 }
 0xaa1   :  { %5658 = vmatpush3.bf16.msra.mxu0 %v7062_v58 }
 0xaa2   :  { %5659 = vmatprep.subr.bf16.mxu0 %v6162_v18 }
 0xaa3   :  { %5296 = vmatpush3.bf16.msra.mxu1 %v5890_v46  ;;  %v5917_v46 = vld [vmem:[#allocation10 + $0xe8] sm:$0xff]  }
 0xaa4   :  { %5297 = vmatprep.subr.bf16.mxu1 %v6160_v16 }
 0xaa5   :  { %5661 = vmatpush3.bf16.msra.mxu0 %v7066_v63 }
 0xaa6   :  { %5662 = vmatprep.subr.bf16.mxu0 %v6162_v18 }
 0xaa7   :  { %5298 = vmatpush3.bf16.msra.mxu1 %v5891_v47  ;;  %v5918_v47 = vld [vmem:[#allocation10 + $0xf0] sm:$0xff]  }
 0xaa8   :  { %5299 = vmatprep.subr.bf16.mxu1 %v6160_v16 }
 0xaa9   :  { %5664 = vmatpush3.bf16.msra.mxu0 %v7070_v3 }
 0xaaa   :  { %5665 = vmatprep.subr.bf16.mxu0 %v6162_v18 }
 0xaab   :  { %5300 = vmatpush3.bf16.msra.mxu1 %v5892_v48  ;;  %v5919_v48 = vld [vmem:[#allocation10 + $0xf8] sm:$0xff]  }
 0xaac   :  { %5301 = vmatprep.subr.bf16.mxu1 %v6160_v16 }
 0xaad   :  { %5667 = vmatpush3.bf16.msra.mxu0 %v7074_v7 }
 0xaae   :  { %5668 = vmatprep.subr.bf16.mxu0 %v6162_v18 }
 0xaaf   :  { %5302 = vmatpush3.bf16.msra.mxu1 %v5893_v49 }
 0xab0   :  { %5303 = vmatprep.subr.bf16.mxu1 %v6160_v16 }
 0xab3   :  { %5304 = vmatpush3.bf16.msra.mxu1 %v5894_v50  ;;  %v3252_v50 = vld [vmem:[#allocation12 + $0x50] sm:$0xff] }
 0xab4   :  { %5305 = vmatprep.subr.bf16.mxu1 %v6160_v16 }
 0xab7   :  { %5306 = vmatpush3.bf16.msra.mxu1 %v5895_v51  ;;  %v3253_v51 = vld [vmem:[#allocation12 + $0x58] sm:$0xff] }
 0xab8   :  { %5311 = vmatprep.subr.bf16.mxu1 %v6160_v16  ;;  %v5669_v52 = vpack.c.bf16 %v3253_v51, %v3252_v50 }
 0xaba   :  { %5670 = vmatpush3.bf16.msra.mxu0 %v5669_v52 }
 0xabb   :  { %5671 = vmatprep.subr.bf16.mxu0 %v6162_v18 }
 0xabe   :  { %5673 = vmatpush3.bf16.msra.mxu0 %v5672_v56 }
 0xabf   :  { %5674 = vmatprep.subr.bf16.mxu0 %v6162_v18 }
 0xac2   :  { %5676 = vmatpush3.bf16.msra.mxu0 %v5675_v0 }
 0xac3   :  { %5677 = vmatprep.subr.bf16.mxu0 %v6162_v18 }
 0xb65   :  { %v2661_v8 = vpop.f32.mrb[52].mxu1  ;;  %v7079_v9 = vpop.f32.mrb[24].mxu0 }
 0xb66   :  { %v5283_v10 = vpop.f32.mrb[53].mxu1  ;;  %v5335_v12 = vpop.f32.mrb[25].mxu0  ;;  %v2667_v32 = vpack.c.bf16 %v2661_v8, %v2661_v8  ;;  %v2968_v40 = vpack.c.bf16 %v7079_v9, %v7079_v9 }
 0xb67   :  { %v2664_v13 = vpop.f32.mrb[54].mxu1  ;;  %v2965_v14 = vpop.f32.mrb[26].mxu0 }
 0xb68   :  { %v5284_v15 = vpop.f32.mrb[55].mxu1  ;;  %v5336_v57 = vpop.f32.mrb[27].mxu0 }
 0xb6d   :  { %v2723_v59 = vpop.f32.mrb[56].mxu1  ;;  %v7081_v17 = vpop.f32.mrb[28].mxu0 }
 0xb6e   :  { %v2729_v1 = vpack.c.bf16 %v2723_v59, %v2723_v59  ;;  %v5289_v4 = vpop.f32.mrb[57].mxu1  ;;  %v5361_v19 = vpop.f32.mrb[29].mxu0  ;;  %v3120_v49 = vpack.c.bf16 %v7081_v17, %v7081_v17 }
 0xb6f   :  { %v2726_v20 = vpop.f32.mrb[58].mxu1  ;;  %v3117_v21 = vpop.f32.mrb[30].mxu0 }
 0xb70   :  { %v5290_v22 = vpop.f32.mrb[59].mxu1  ;;  %5308 = vmatmul.mubr.bf16.vlgmr.msra.gmra.mrb[60].mxu1 %v2729_v1  ;;  %v5362_v23 = vpop.f32.mrb[31].mxu0 }
 0xb71   :  { %5312 = vmatpush3.bf16.msra.mxu1 %v5896_v62  ;;  %5327 = vmatprep.mubr.msk.bf16.mxu1 %vm6161_vm1, %v6160_v16 }
 0xb72   :  { %5313 = vmatprep.subr.bf16.mxu1 %v6160_v16 }
 0xb75   :  { %5314 = vmatpush3.bf16.msra.mxu1 %v5897_v24 }
 0xb76   :  { %5315 = vmatprep.subr.bf16.mxu1 %v6160_v16 }
 0xb79   :  { %5316 = vmatpush3.bf16.msra.mxu1 %v5898_v25 }
 0xb7a   :  { %5317 = vmatprep.subr.bf16.mxu1 %v6160_v16 }
 0xb7d   :  { %5318 = vmatpush3.bf16.msra.mxu1 %v5899_v26 }
 0xb7e   :  { %5319 = vmatprep.subr.bf16.mxu1 %v6160_v16 }
 0xb81   :  { %5320 = vmatpush3.bf16.msra.mxu1 %v5900_v27 }
 0xb82   :  { %5321 = vmatprep.subr.bf16.mxu1 %v6160_v16 }
 0xb85   :  { %5322 = vmatpush3.bf16.msra.mxu1 %v5901_v28 }
 0xb86   :  { %5323 = vmatprep.subr.bf16.mxu1 %v6160_v16 }
 0xb89   :  { %5324 = vmatpush3.bf16.msra.mxu1 %v5902_v29 }
 0xb8a   :  { %5325 = vmatprep.subr.bf16.mxu1 %v6160_v16 }
 0xb8d   :  { %5326 = vmatpush3.bf16.msra.mxu1 %v5903_v30  ;;  %v4363_v30 = vld [vmem:[%s7318_s16] ss:$0 sm:$0xff] }
 0xb8e   :  { %5337 = vmatprep.subr.bf16.mxu1 %v6160_v16 }
 0xb90   :  { %5328 = vmatmul.mubr.bf16.vlgmr.msra.gmra.mrb[60].mxu1 %v2667_v32  ;;  %v4364_v32 = vld [vmem:[%s7319_s17] ss:$0 sm:$0xff] }
 0xb91   :  { %5338 = vmatpush3.bf16.msra.mxu1 %v5904_v31  ;;  %5353 = vmatprep.mubr.msk.bf16.mxu1 %vm6161_vm1, %v6160_v16 }
 0xb92   :  { %5339 = vmatprep.subr.bf16.mxu1 %v6160_v16 }
 0xb95   :  { %5340 = vmatpush3.bf16.msra.mxu1 %v5905_v33 }
 0xb96   :  { %5341 = vmatprep.subr.bf16.mxu1 %v6160_v16 }
 0xb99   :  { %5342 = vmatpush3.bf16.msra.mxu1 %v5906_v34 }
 0xb9a   :  { %5343 = vmatprep.subr.bf16.mxu1 %v6160_v16 }
 0xb9d   :  { %5344 = vmatpush3.bf16.msra.mxu1 %v5907_v35 }
 0xb9e   :  { %5345 = vmatprep.subr.bf16.mxu1 %v6160_v16 }
 0xba1   :  { %5346 = vmatpush3.bf16.msra.mxu1 %v5908_v36 }
 0xba2   :  { %5347 = vmatprep.subr.bf16.mxu1 %v6160_v16 }
 0xba5   :  { %5348 = vmatpush3.bf16.msra.mxu1 %v5909_v37 }
 0xba6   :  { %5349 = vmatprep.subr.bf16.mxu1 %v6160_v16 }
 0xba9   :  { %5350 = vmatpush3.bf16.msra.mxu1 %v5910_v38 }
 0xbaa   :  { %5351 = vmatprep.subr.bf16.mxu1 %v6160_v16 }
 0xbad   :  { %5352 = vmatpush3.bf16.msra.mxu1 %v5911_v39  ;;  %v3741_v39 = vld [vmem:[#allocation13 + $0x2] sm:$0x1] }
 0xbae   :  { %5363 = vmatprep.subr.bf16.mxu1 %v6160_v16 }
 0xbb0   :  { %5354 = vmatmul.mubr.bf16.vlgmr.msra.gmra.mrb[60].mxu1 %v2968_v40  ;;  %v3502_v40 = vld [vmem:[#allocation13 + $0x1] sm:$0x1] }
 0xbb1   :  { %5364 = vmatpush3.bf16.msra.mxu1 %v5912_v41  ;;  %5379 = vmatprep.mubr.msk.bf16.mxu1 %vm6161_vm1, %v6160_v16  ;;  %v3893_v41 = vld [vmem:[#allocation13 + $0x3] sm:$0x1] }
 0xbb2   :  { %5365 = vmatprep.subr.bf16.mxu1 %v6160_v16 }
 0xbb5   :  { %5366 = vmatpush3.bf16.msra.mxu1 %v5913_v42  ;;  %v5920_v42 = vld [vmem:[%s7321_s19 + $0x40] sm:$0xff]  }
 0xbb6   :  { %5367 = vmatprep.subr.bf16.mxu1 %v6160_v16 }
 0xbb9   :  { %5368 = vmatpush3.bf16.msra.mxu1 %v5914_v43  ;;  %v5921_v43 = vld [vmem:[%s7321_s19 + $0x48] sm:$0xff]  }
 0xbba   :  { %5369 = vmatprep.subr.bf16.mxu1 %v6160_v16 }
 0xbbd   :  { %5370 = vmatpush3.bf16.msra.mxu1 %v5915_v44  ;;  %v5922_v44 = vld [vmem:[%s7321_s19 + $0x50] sm:$0xff]  }
 0xbbe   :  { %5371 = vmatprep.subr.bf16.mxu1 %v6160_v16 }
 0xbc1   :  { %5372 = vmatpush3.bf16.msra.mxu1 %v5916_v45  ;;  %v5923_v45 = vld [vmem:[%s7321_s19 + $0x58] sm:$0xff]  }
 0xbc2   :  { %5373 = vmatprep.subr.bf16.mxu1 %v6160_v16 }
 0xbc5   :  { %5374 = vmatpush3.bf16.msra.mxu1 %v5917_v46  ;;  %v5924_v46 = vld [vmem:[%s7321_s19 + $0x60] sm:$0xff]  }
 0xbc6   :  { %5375 = vmatprep.subr.bf16.mxu1 %v6160_v16 }
 0xbc9   :  { %5376 = vmatpush3.bf16.msra.mxu1 %v5918_v47  ;;  %v5925_v47 = vld [vmem:[%s7321_s19 + $0x68] sm:$0xff]  }
 0xbca   :  { %5377 = vmatprep.subr.bf16.mxu1 %v6160_v16 }
 0xbcd   :  { %5378 = vmatpush3.bf16.msra.mxu1 %v5919_v48  ;;  %v5926_v48 = vld [vmem:[%s7321_s19 + $0x70] sm:$0xff]  }
 0xbce   :  { %5505 = vmatprep.subr.bf16.mxu1 %v6160_v16 }
 0xbd0   :  { %5380 = vmatmul.mubr.bf16.vlgmr.msra.gmra.mrb[60].mxu1 %v3120_v49  ;;  %v5927_v49 = vld [vmem:[%s7321_s19 + $0x78] sm:$0xff]  }
 0xbd1   :  { %5507 = vmatprep.mubr.msk.bf16.mxu1 %vm6161_vm1, %v6160_v16 }
 0xca3   :  { %v3220_v2 = vpop.f32.mrb[60].mxu1 }
 0xca4   :  { %v3227_v5 = vsel %vm2623_vm11, %v3220_v2, 0.0  ;;  %v5381_v6 = vpop.f32.mrb[61].mxu1  ;;  %v3234_v59 = vmul.f32 %v3220_v2, %v3220_v2 }
 0xca5   :  { %v3228_v8 = vrot.slane %v3227_v5, 4  ;;  %v3223_v9 = vpop.f32.mrb[62].mxu1 }
 0xca6   :  { %v5382_v10 = vpop.f32.mrb[63].mxu1  ;;  %v3235_v62 = vsel %vm2623_vm11, %v3234_v59, 0.0  ;;  %v5931_v59 = vld [vmem:[%s7321_s19 + $0x18] sm:$0xff]  }
 0xca7   :  { %v3229_v12 = vadd.f32 %v3228_v8, %v3227_v5  ;;  %v3236_v17 = vrot.slane %v3235_v62, 4 }
 0xca9   :  { %v3230_v13 = vrot.slane %v3229_v12, 2 }
 0xcab   :  { %v3231_v14 = vadd.f32 %v3230_v13, %v3229_v12 }
 0xcad   :  { %v3232_v15 = vrot.slane %v3231_v14, 1 }
 0xcaf   :  { %v3233_v57 = vadd.f32 %v3232_v15, %v3231_v14  ;;  %v5929_v15 = vld [vmem:[%s7321_s19 + $0x8] sm:$0xff]  }
 0xcb1   :  { %5416 = vmatmul.mubr.f32.vlgmr.msra.gmra.mrb[14].mxu0 %v3233_v57  ;;  %v5930_v57 = vld [vmem:[%s7321_s19 + $0x10] sm:$0xff]  }
 0xcb2   :  { %5679 = vmatpush3.bf16.msra.mxu0 %v7059_v55  ;;  %5450 = vmatprep.mubr.msk.f32.mxu0 %vm6161_vm1, %v6160_v16  ;;  %v3237_v55 = vadd.f32 %v3236_v17, %v3235_v62  ;;  %v5932_v62 = vld [vmem:[%s7321_s19 + $0x20] sm:$0xff]   ;;  %v5933_v17 = vld [vmem:[%s7321_s19 + $0x28] sm:$0xff]  }
 0xcb3   :  { %5680 = vmatprep.subr.bf16.mxu0 %v6162_v18 }
 0xcb4   :  { %v3238_v1 = vrot.slane %v3237_v55, 2 }
 0xcb6   :  { %5682 = vmatpush3.bf16.msra.mxu0 %v7062_v58  ;;  %v3239_v58 = vadd.f32 %v3238_v1, %v3237_v55  ;;  %v5934_v55 = vld [vmem:[%s7321_s19 + $0x30] sm:$0xff]   ;;  %v5935_v1 = vld [vmem:[%s7321_s19 + $0x38] sm:$0xff]  }
 0xcb7   :  { %5683 = vmatprep.subr.bf16.mxu0 %v6162_v18 }
 0xcba   :  { %5685 = vmatpush3.bf16.msra.mxu0 %v7066_v63  ;;  %v3240_v63 = vrot.slane %v3239_v58, 1 }
 0xcbb   :  { %5686 = vmatprep.subr.bf16.mxu0 %v6162_v18 }
 0xcbc   :  { %v3241_v4 = vadd.f32 %v3240_v63, %v3239_v58  ;;  %v5936_v58 = vld [vmem:[%s7321_s19 + $0x80] sm:$0xff]  }
 0xcbe   :  { %5688 = vmatpush3.bf16.msra.mxu0 %v7070_v3 }
 0xcbf   :  { %5689 = vmatprep.subr.bf16.mxu0 %v6162_v18 }
 0xcc2   :  { %5691 = vmatpush3.bf16.msra.mxu0 %v7074_v7 }
 0xcc3   :  { %5692 = vmatprep.subr.bf16.mxu0 %v6162_v18 }
 0xcc6   :  { %5694 = vmatpush3.bf16.msra.mxu0 %v5669_v52 }
 0xcc7   :  { %5695 = vmatprep.subr.bf16.mxu0 %v6162_v18 }
 0xcca   :  { %5697 = vmatpush3.bf16.msra.mxu0 %v5672_v56 }
 0xccb   :  { %5698 = vmatprep.subr.bf16.mxu0 %v6162_v18 }
 0xcce   :  { %5700 = vmatpush3.bf16.msra.mxu0 %v5675_v0 }
 0xccf   :  { %5453 = vmatprep.subr.bf16.mxu0 %v6160_v16 }
 0xcd1   :  { %5451 = vmatmul.mubr.f32.vlgmr.msra.gmra.mrb[32].mxu0 %v3241_v4  ;;  %v5937_v4 = vld [vmem:[%s7321_s19 + $0x88] sm:$0xff]  }
 0xcd2   :  { %5455 = vmatprep.mubr.msk.bf16.mxu0 %vm6161_vm1, %v6160_v16 }
 0xd84   :  { %v3324_v3 = vpop.f32.mrb[14].mxu0 }
 0xd85   :  { %v3328_v7 = vmul.f32 0.125, %v3324_v3  ;;  %v5417_v19 = vpop.f32.mrb[15].mxu0  ;;  %v5938_v3 = vld [vmem:[%s7321_s19 + $0x90] sm:$0xff]  }
 0xd86   :  { %v5940_v19 = vld [vmem:[%s7321_s19 + $0xa0] sm:$0xff]  }
 0xd87   :  { %v3406_v20 = vrot.slane %v3328_v7, %v6820_v11  ;;  %v3400_v23 = vmul.f32 %v3328_v7, %v3328_v7  ;;  %v5939_v7 = vld [vmem:[%s7321_s19 + $0x98] sm:$0xff]  }
 0xd89   :  { %v3407_v21 = vsub.f32 %v3220_v2, %v3406_v20  ;;  %v5928_v2 = vld [vmem:[%s7321_s19] sm:$0xff]   ;;  %v5941_v20 = vld [vmem:[%s7321_s19 + $0xa8] sm:$0xff]  }
 0xda4   :  { %v3395_v22 = vpop.f32.mrb[32].mxu0 }
 0xda5   :  { %v3399_v24 = vmul.f32 0.125, %v3395_v22  ;;  %v5452_v25 = vpop.f32.mrb[33].mxu0  ;;  %v5943_v22 = vld [vmem:[%s7321_s19 + $0xb8] sm:$0xff]  }
 0xda6   :  { %v5945_v25 = vld [vmem:[%s7321_s19 + $0xc8] sm:$0xff]  }
 0xda7   :  { %v3401_v18 = vsub.f32 %v3399_v24, %v3400_v23  ;;  %v5944_v24 = vld [vmem:[%s7321_s19 + $0xc0] sm:$0xff]  }
 0xda9   :  { %v3402_v26 = vmax.f32 %v3401_v18, 0.0  ;;  %v5946_v18 = vld [vmem:[%s7321_s19 + $0xd0] sm:$0xff]  }
 0xdab   :  { %v3408_v27 = vadd.f32 1e-05, %v3402_v26  ;;  %v5947_v26 = vld [vmem:[%s7321_s19 + $0xd8] sm:$0xff]  }
 0xdad   :  { %5956 = vrsqrt.f32 %v3408_v27  ;;  %v5948_v27 = vld [vmem:[%s7321_s19 + $0xe0] sm:$0xff]  }
 0xdb7   :  { %v5957_v28 = vpop.eup %5956 }
 0xdb8   :  { %v3413_v29 = vrot.slane %v5957_v28, %v6820_v11  ;;  %v3435_v11 = vld [vmem:[#allocation13] sm:$0x1]  ;;  %v5949_v28 = vld [vmem:[%s7321_s19 + $0xe8] sm:$0xff]  }
 0xdba   :  { %v3414_v31 = vmul.f32 %v3413_v29, %v3407_v21  ;;  %v5942_v21 = vld [vmem:[%s7321_s19 + $0xb0] sm:$0xff]  }
 0xdbb   :  { %v5950_v29 = vld [vmem:[%s7321_s19 + $0xf0] sm:$0xff]  }
 0xdbc   :  { %v3422_v33 = vmul.f32 %v4363_v30, %v3414_v31  ;;  %v5951_v30 = vld [vmem:[%s7321_s19 + $0xf8] sm:$0xff]  }
 0xdbe   :  { %v3430_v34 = vadd.f32 %v4364_v32, %v3422_v33 }
 0xdc0   :  { %vm3431_vm13 = vcmp.ge.f32.partialorder %v3430_v34, 0.0  ;;  %v3432_v35 = vmul.f32 0.2, %v3430_v34 }
 0xdc2   :  { %v3433_v36 = vsel %vm3431_vm13, %v3430_v34, %v3432_v35 }
 0xdc3   :  { %v3434_v37 = vpack.c.bf16 %v3433_v36, %v3433_v36 }
 0xdc5   :  { %v3442_v38 = vsel %vm3440_vm14, %v3434_v37, 0 }
 0xdc6   :  { %5454 = vmatpush3.bf16.msra.mxu0 %v3442_v38  ;;  %5506 = vmatpush3.bf16.msra.mxu1 %v3442_v38 }
 0xdc7   :  { %5459 = vmatprep.subr.bf16.mxu0 %v6160_v16  ;;  %5531 = vmatprep.subr.bf16.mxu1 %v6160_v16 }
 0xdc9   :  { %5456 = vmatmul.mubr.msk.bf16.vlgmr.msra.gmra.mrb[36].mxu0 %vm3436_vm15, %v3435_v11  ;;  %5508 = vmatmul.mubr.msk.bf16.vlgmr.msra.gmra.mrb[64].mxu1 %vm3436_vm15, %v3741_v39 }
 0xdca   :  { %5460 = vmatpush3.bf16.msra.mxu0 %v3442_v38  ;;  %5532 = vmatpush3.bf16.msra.mxu1 %v3442_v38 }
 0xdcb   :  { %5461 = vmatprep.mubr.msk.bf16.mxu0 %vm6161_vm1, %v6160_v16  ;;  %5533 = vmatprep.mubr.msk.bf16.mxu1 %vm6161_vm1, %v6160_v16 }
 0xdcc   :  { %5465 = vmatprep.subr.bf16.mxu0 %v6160_v16 }
 0xdd1   :  { %5462 = vmatmul.mubr.msk.bf16.vlgmr.msra.gmra.mrb[40].mxu0 %vm3436_vm15, %v3502_v40  ;;  %5534 = vmatmul.mubr.msk.bf16.vlgmr.msra.gmra.mrb[68].mxu1 %vm3436_vm15, %v3893_v41 }
 0xdd2   :  { %5466 = vmatpush3.bf16.msra.mxu0 %v5920_v42  ;;  %5481 = vmatprep.mubr.msk.bf16.mxu0 %vm6161_vm1, %v6160_v16 }
 0xdd3   :  { %5467 = vmatprep.subr.bf16.mxu0 %v6160_v16 }
 0xdd6   :  { %5468 = vmatpush3.bf16.msra.mxu0 %v5921_v43 }
 0xdd7   :  { %5469 = vmatprep.subr.bf16.mxu0 %v6160_v16 }
 0xdda   :  { %5470 = vmatpush3.bf16.msra.mxu0 %v5922_v44 }
 0xddb   :  { %5471 = vmatprep.subr.bf16.mxu0 %v6160_v16 }
 0xdde   :  { %5472 = vmatpush3.bf16.msra.mxu0 %v5923_v45 }
 0xddf   :  { %5473 = vmatprep.subr.bf16.mxu0 %v6160_v16 }
 0xde2   :  { %5474 = vmatpush3.bf16.msra.mxu0 %v5924_v46 }
 0xde3   :  { %5475 = vmatprep.subr.bf16.mxu0 %v6160_v16 }
 0xde6   :  { %5476 = vmatpush3.bf16.msra.mxu0 %v5925_v47 }
 0xde7   :  { %5477 = vmatprep.subr.bf16.mxu0 %v6160_v16 }
 0xdea   :  { %5478 = vmatpush3.bf16.msra.mxu0 %v5926_v48 }
 0xdeb   :  { %5479 = vmatprep.subr.bf16.mxu0 %v6160_v16 }
 0xdee   :  { %5480 = vmatpush3.bf16.msra.mxu0 %v5927_v49 }
 0xdef   :  { %5485 = vmatprep.subr.bf16.mxu0 %v6160_v16 }
 0xe9c   :  { %v3478_v50 = vpop.f32.mrb[36].mxu0  ;;  %v7190_v51 = vpop.f32.mrb[64].mxu1 }
 0xe9d   :  { %v5457_v52 = vpop.f32.mrb[37].mxu0  ;;  %v5509_v53 = vpop.f32.mrb[65].mxu1  ;;  %v3484_v63 = vpack.c.bf16 %v3478_v50, %v3478_v50  ;;  %v3785_v23 = vpack.c.bf16 %v7190_v51, %v7190_v51 }
 0xe9e   :  { %v3481_v54 = vpop.f32.mrb[38].mxu0  ;;  %v3782_v56 = vpop.f32.mrb[66].mxu1 }
 0xe9f   :  { %v5458_v60 = vpop.f32.mrb[39].mxu0  ;;  %v5510_v61 = vpop.f32.mrb[67].mxu1 }
 0xea4   :  { %v3540_v0 = vpop.f32.mrb[40].mxu0  ;;  %v7195_v5 = vpop.f32.mrb[68].mxu1 }
 0xea5   :  { %v3546_v6 = vpack.c.bf16 %v3540_v0, %v3540_v0  ;;  %v5463_v8 = vpop.f32.mrb[41].mxu0  ;;  %v5535_v9 = vpop.f32.mrb[69].mxu1  ;;  %v3937_v31 = vpack.c.bf16 %v7195_v5, %v7195_v5 }
 0xea6   :  { %v3543_v10 = vpop.f32.mrb[42].mxu0  ;;  %v3934_v12 = vpop.f32.mrb[70].mxu1 }
 0xea7   :  { %v5464_v13 = vpop.f32.mrb[43].mxu0  ;;  %5482 = vmatmul.mubr.bf16.vlgmr.msra.gmra.mrb[44].mxu0 %v3546_v6  ;;  %v5536_v14 = vpop.f32.mrb[71].mxu1 }
 0xea8   :  { %5486 = vmatpush3.bf16.msra.mxu0 %v5928_v2  ;;  %5501 = vmatprep.mubr.msk.bf16.mxu0 %vm6161_vm1, %v6160_v16 }
 0xea9   :  { %5487 = vmatprep.subr.bf16.mxu0 %v6160_v16 }
 0xeac   :  { %5488 = vmatpush3.bf16.msra.mxu0 %v5929_v15 }
 0xead   :  { %5489 = vmatprep.subr.bf16.mxu0 %v6160_v16 }
 0xeb0   :  { %5490 = vmatpush3.bf16.msra.mxu0 %v5930_v57 }
 0xeb1   :  { %5491 = vmatprep.subr.bf16.mxu0 %v6160_v16 }
 0xeb4   :  { %5492 = vmatpush3.bf16.msra.mxu0 %v5931_v59 }
 0xeb5   :  { %5493 = vmatprep.subr.bf16.mxu0 %v6160_v16 }
 0xeb8   :  { %5494 = vmatpush3.bf16.msra.mxu0 %v5932_v62 }
 0xeb9   :  { %5495 = vmatprep.subr.bf16.mxu0 %v6160_v16 }
 0xebc   :  { %5496 = vmatpush3.bf16.msra.mxu0 %v5933_v17 }
 0xebd   :  { %5497 = vmatprep.subr.bf16.mxu0 %v6160_v16 }
 0xec0   :  { %5498 = vmatpush3.bf16.msra.mxu0 %v5934_v55 }
 0xec1   :  { %5499 = vmatprep.subr.bf16.mxu0 %v6160_v16 }
 0xec4   :  { %5500 = vmatpush3.bf16.msra.mxu0 %v5935_v1 }
 0xec5   :  { %5511 = vmatprep.subr.bf16.mxu0 %v6160_v16 }
 0xec7   :  { %5502 = vmatmul.mubr.bf16.vlgmr.msra.gmra.mrb[44].mxu0 %v3484_v63 }
 0xec8   :  { %5512 = vmatpush3.bf16.msra.mxu0 %v5936_v58  ;;  %5527 = vmatprep.mubr.msk.bf16.mxu0 %vm6161_vm1, %v6160_v16 }
 0xec9   :  { %5513 = vmatprep.subr.bf16.mxu0 %v6160_v16 }
 0xecc   :  { %5514 = vmatpush3.bf16.msra.mxu0 %v5937_v4 }
 0xecd   :  { %5515 = vmatprep.subr.bf16.mxu0 %v6160_v16 }
 0xed0   :  { %5516 = vmatpush3.bf16.msra.mxu0 %v5938_v3 }
 0xed1   :  { %5517 = vmatprep.subr.bf16.mxu0 %v6160_v16 }
 0xed4   :  { %5518 = vmatpush3.bf16.msra.mxu0 %v5939_v7 }
 0xed5   :  { %5519 = vmatprep.subr.bf16.mxu0 %v6160_v16 }
 0xed8   :  { %5520 = vmatpush3.bf16.msra.mxu0 %v5940_v19 }
 0xed9   :  { %5521 = vmatprep.subr.bf16.mxu0 %v6160_v16 }
 0xedc   :  { %5522 = vmatpush3.bf16.msra.mxu0 %v5941_v20 }
 0xedd   :  { %5523 = vmatprep.subr.bf16.mxu0 %v6160_v16 }
 0xee0   :  { %5524 = vmatpush3.bf16.msra.mxu0 %v5942_v21 }
 0xee1   :  { %5525 = vmatprep.subr.bf16.mxu0 %v6160_v16 }
 0xee4   :  { %5526 = vmatpush3.bf16.msra.mxu0 %v5943_v22 }
 0xee5   :  { %5537 = vmatprep.subr.bf16.mxu0 %v6160_v16 }
 0xee7   :  { %5528 = vmatmul.mubr.bf16.vlgmr.msra.gmra.mrb[44].mxu0 %v3785_v23 }
 0xee8   :  { %5538 = vmatpush3.bf16.msra.mxu0 %v5944_v24  ;;  %5553 = vmatprep.mubr.msk.bf16.mxu0 %vm6161_vm1, %v6160_v16 }
 0xee9   :  { %5539 = vmatprep.subr.bf16.mxu0 %v6160_v16 }
 0xeec   :  { %5540 = vmatpush3.bf16.msra.mxu0 %v5945_v25 }
 0xeed   :  { %5541 = vmatprep.subr.bf16.mxu0 %v6160_v16 }
 0xef0   :  { %5542 = vmatpush3.bf16.msra.mxu0 %v5946_v18 }
 0xef1   :  { %5543 = vmatprep.subr.bf16.mxu0 %v6160_v16 }
 0xef4   :  { %5544 = vmatpush3.bf16.msra.mxu0 %v5947_v26 }
 0xef5   :  { %5545 = vmatprep.subr.bf16.mxu0 %v6160_v16 }
 0xef8   :  { %5546 = vmatpush3.bf16.msra.mxu0 %v5948_v27 }
 0xef9   :  { %5547 = vmatprep.subr.bf16.mxu0 %v6160_v16 }
 0xefc   :  { %5548 = vmatpush3.bf16.msra.mxu0 %v5949_v28 }
 0xefd   :  { %5549 = vmatprep.subr.bf16.mxu0 %v6160_v16 }
 0xf00   :  { %5550 = vmatpush3.bf16.msra.mxu0 %v5950_v29 }
 0xf01   :  { %5551 = vmatprep.subr.bf16.mxu0 %v6160_v16 }
 0xf04   :  { %5552 = vmatpush3.bf16.msra.mxu0 %v5951_v30 }
 0xf07   :  { %5554 = vmatmul.mubr.bf16.vlgmr.msra.gmra.mrb[44].mxu0 %v3937_v31 }
 0xfda   :  { %v4037_v32 = vpop.f32.mrb[44].mxu0 }
 0xfdb   :  { %4045 = vst.msk [vmem:[%s7347_s29] sm:$0x3] %vm4044_vm0, %v4037_v32  ;;  %v5555_v33 = vpop.f32.mrb[45].mxu0 }
 0xfdc   :  { %v4040_v34 = vpop.f32.mrb[46].mxu0 }
 0xfdd   :  { %v5556_v35 = vpop.f32.mrb[47].mxu0 }
 0xfde   :  { %4050 = vsyncpa [#allocation3], 1 }
 0xfdf   :  { %4051 = vsyncpa [#allocation5], 1 }
 0xfe0   :  { %4052 = vsyncpa [#allocation8], 1 }
 0xfe1   :  { %4053 = vsyncpa [#allocation11], 1 }
 0xfe2   :  { %4054 = vsyncpa [#allocation14], 1 }

</bundles_post_ra>
